<compile_context>
chip_gen: v5e
topology: v5e:2x2
jax: 0.10.0
libtpu: 0.0.40
codegen_flags: <defaults>
</compile_context>

<pallas_src>
import numpy as np
import jax
import jax.numpy as jnp
from jax.experimental import pallas as pl
from jax.experimental.pallas import tpu as pltpu

PAD = 1  # padding_idx


def _round_up(x, m):
    return ((x + m - 1) // m) * m


def _pad_axis(x, axis, target, value=0.0):
    pad = target - x.shape[axis]
    if pad <= 0:
        return x
    widths = [(0, 0)] * x.ndim
    widths[axis] = (0, pad)
    return jnp.pad(x, widths, constant_values=value)


def _vmem_buf_bytes(shape, itemsize):
    """VMEM footprint of one pipeline buffer, including (8,128) tile padding."""
    s = list(shape)
    s[-1] = _round_up(s[-1], 128)
    if len(s) >= 2:
        s[-2] = _round_up(s[-2], 8)
    n = 1
    for v in s:
        n *= v
    return n * itemsize


def text_level_gnn_forward(params, node_sets, neighbor_sets, public_edge_mask,
                           *, tb=8, tl=128, lc=8, emb_dtype=jnp.float32):
    """node_sets: (B, L) int32, neighbor_sets: (B, L, N) int32,
       public_edge_mask: (B, L, N) bool  ->  (B, C) float32 softmax output."""
    assert tb % 8 == 0 and lc % 8 == 0 and tl % lc == 0

    emb = params["embedding"].astype(jnp.float32)           # (V, D)
    wmat = params["weight_matrix"].astype(jnp.float32)      # (V, V)
    pw = params["public_edge_weight"].astype(jnp.float32)   # (1, 1)
    ir = params["information_rate"].astype(jnp.float32)     # (V, 1)
    lw = params["linear_weight"].astype(jnp.float32)        # (C, D)
    lb = params["linear_bias"].astype(jnp.float32)          # (C,)

    B, L = node_sets.shape
    N = neighbor_sets.shape[-1]
    D = emb.shape[1]
    C = lw.shape[0]
    Cp = _round_up(C, 128)                                   # lane-dense output store

    # ---- tile sizes (clamped so tiny demo shapes are not over-padded) -------
    tb_eff = min(tb, _round_up(B, 8))
    tl_eff = min(tl, _round_up(L, lc))
    Bp = _round_up(B, tb_eff)
    Lp = _round_up(L, tl_eff)
    n_chunks = tl_eff // lc

    # ---------- plain-JAX glue: gathers + folding (XLA fuses these) ----------
    # neighbor stream laid out (B, N, L, D) so the kernel block's last two dims
    # are (tl, D): L in sublanes, compact D in lanes.
    nbrT = jnp.transpose(neighbor_sets, (0, 2, 1))                     # (B, N, L)
    nodeT = jnp.broadcast_to(node_sets[:, None, :], nbrT.shape)        # (B, N, L)
    maskT = jnp.transpose(public_edge_mask, (0, 2, 1))                 # (B, N, L)

    # edge_weight = raw*(~public) + public_edge_weight*public, zeroed at pad edges
    ew = jnp.where(maskT, pw[0, 0], wmat[nodeT, nbrT])
    ew = jnp.where((nodeT == PAD) | (nbrT == PAD), 0.0, ew).astype(jnp.float32)

    # edge weight folded into the gathered neighbor embeddings (product is
    # identical, so the PyTorch "==0 -> -1e18" sentinel semantics are unchanged)
    nbrw = (ew[..., None] * emb[nbrT]).astype(emb_dtype)               # (B, N, L, D)

    # gate r = information_rate[node], forced to 1 at padded node positions;
    # the node stream carries r*emb_node in lanes [0:D] and (1-r) in lane D.
    r = ir[node_sets]                                                  # (B, L, 1)
    r = jnp.where((node_sets == PAD)[:, :, None], 1.0, r)
    node_aug = jnp.concatenate([r * emb[node_sets], 1.0 - r],
                               axis=-1).astype(emb_dtype)              # (B, L, D+1)

    # pad batch / sequence to tile multiples.  Padded rows are all-zero, so
    # rc=0, node=0, nbrw=0 -> contribution is exactly 0.
    nbrw = _pad_axis(_pad_axis(nbrw, 0, Bp), 2, Lp)                    # (Bp, N, Lp, D)
    node_aug = _pad_axis(_pad_axis(node_aug, 0, Bp), 1, Lp)            # (Bp, Lp, D+1)

    # zero-padded linear weight / bias (padded class columns are exactly 0)
    w_p = jnp.zeros((D, Cp), jnp.float32).at[:, :C].set(lw.T)
    b_p = jnp.zeros((1, Cp), jnp.float32).at[0, :C].set(lb)

    # ---- VMEM budget from the actual double-buffered block footprint --------
    esz = jnp.dtype(emb_dtype).itemsize
    vmem_need = (
        2 * _vmem_buf_bytes((tb_eff, N, tl_eff, D), esz)       # nbrw
        + 2 * _vmem_buf_bytes((tb_eff, tl_eff, D + 1), esz)    # node_aug
        + 2 * _vmem_buf_bytes((D, Cp), 4)                      # linear weight
        + 2 * _vmem_buf_bytes((1, Cp), 4)                      # linear bias
        + 2 * _vmem_buf_bytes((tb_eff, Cp), 4)                 # output block
        + _vmem_buf_bytes((tb_eff, lc, D), 4)                  # accumulator scratch
    )
    vmem_limit = min(48 * 1024 * 1024,
                     max(16 * 1024 * 1024, int(1.4 * vmem_need) + (2 << 20)))

    # ------------------------------- kernel -----------------------------------
    def kernel(nbrw_ref,   # VMEM (tb, N, tl, D)   edge-weighted neighbor embeddings
               node_ref,   # VMEM (tb, tl, D+1)    [r*emb_node | 1-r]
               w_ref,      # VMEM (D, Cp)          linear weight (transposed, zero-padded)
               b_ref,      # VMEM (1, Cp)          linear bias (zero-padded)
               out_ref,    # VMEM (tb, Cp)         softmax output (lane-dense)
               acc_ref):   # VMEM (tb, lc, D) f32  resident L-sum accumulator
        l_idx = pl.program_id(1)

        @pl.when(l_idx == 0)
        def _init():
            acc_ref[...] = jnp.zeros_like(acc_ref)

        neg = jnp.float32(-1e18)
        # Statically unrolled chunk loop over lc-row sublane slabs of the L
        # tile: keeps the live working set at O(tb*lc*D) while the DMA block
        # stays large; all slices are static.
        for c in range(n_chunks):
            sl = slice(c * lc, (c + 1) * lc)
            m = None
            for n in range(N):                                   # running max over neighbors
                t = nbrw_ref[:, n, sl, :].astype(jnp.float32)    # (tb, lc, D)
                t = jnp.where(t == 0.0, neg, t)                  # exact-zero sentinel (as in PyTorch)
                m = t if m is None else jnp.maximum(m, t)
            na = node_ref[:, sl, :].astype(jnp.float32)          # (tb, lc, D+1)
            node = na[:, :, :D]                                  # r * emb_node
            rc = na[:, :, D:D + 1]                               # (1 - r), lane-broadcast
            acc_ref[...] += rc * m + node                        # VPU adds only; no XLU in hot loop

        @pl.when(l_idx == pl.num_programs(1) - 1)
        def _finalize():
            s = jnp.sum(acc_ref[...], axis=1)                    # (tb, D) — single XLU reduce
            x = jnp.dot(s, w_ref[...],
                        preferred_element_type=jnp.float32) + b_ref[...]
            x = jnp.maximum(x, 0.0)                              # ReLU
            cls = jax.lax.broadcasted_iota(jnp.int32, x.shape, 1)
            x = jnp.where(cls < C, x, jnp.float32(-1e30))        # mask padded classes
            x = x - jnp.max(x, axis=-1, keepdims=True)
            e = jnp.exp(x)
            out_ref[...] = (e / jnp.sum(e, axis=-1, keepdims=True)).astype(out_ref.dtype)

    grid = (Bp // tb_eff, Lp // tl_eff)
    out = pl.pallas_call(
        kernel,
        out_shape=jax.ShapeDtypeStruct((Bp, Cp), jnp.float32),
        grid_spec=pltpu.PrefetchScalarGridSpec(
            num_scalar_prefetch=0,
            grid=grid,
            in_specs=[
                pl.BlockSpec((tb_eff, N, tl_eff, D), lambda b, l: (b, 0, l, 0)),
                pl.BlockSpec((tb_eff, tl_eff, D + 1), lambda b, l: (b, l, 0)),
                pl.BlockSpec((D, Cp), lambda b, l: (0, 0)),
                pl.BlockSpec((1, Cp), lambda b, l: (0, 0)),
            ],
            out_specs=pl.BlockSpec((tb_eff, Cp), lambda b, l: (b, 0)),
            scratch_shapes=[pltpu.VMEM((tb_eff, lc, D), jnp.float32)],
        ),
        compiler_params=pltpu.CompilerParams(
            dimension_semantics=("parallel", "arbitrary"),
            vmem_limit_bytes=vmem_limit,
        ),
    )(nbrw, node_aug, w_p, b_p)

    return out[:B, :C]


def _reference_forward(params, node_sets, neighbor_sets, public_edge_mask):
    """Pure-JAX reference mirroring the PyTorch module exactly."""
    emb = params["embedding"]
    wmat = params["weight_matrix"]
    pw = params["public_edge_weight"]
    ir = params["information_rate"]
    lw = params["linear_weight"]
    lb = params["linear_bias"]

    embedded_node = emb[node_sets]
    node_exp = jnp.broadcast_to(node_sets[:, :, None], neighbor_sets.shape)
    edge_weight = wmat[node_exp, neighbor_sets]
    a = edge_weight * (~public_edge_mask)
    b = pw[0, 0] * public_edge_mask.astype(jnp.float32)
    edge_weight = a + b
    embedded_neighbor = emb[neighbor_sets]
    pad = (node_exp == PAD) | (neighbor_sets == PAD)
    edge_weight = jnp.where(pad, 0.0, edge_weight)

    tmp = edge_weight[..., None] * embedded_neighbor
    tmp = jnp.where(tmp == 0.0, -1e18, tmp)
    m = jnp.max(tmp, axis=2)
    r = ir[node_sets]
    r = jnp.where((node_sets == PAD)[..., None], 1.0, r)
    h = (1.0 - r) * m + r * embedded_node
    s = jnp.sum(h, axis=1)
    x = jax.nn.relu(s @ lw.T + lb)
    return jax.nn.softmax(x, axis=1)


if __name__ == "__main__":
    V, D, B, L, P, C = 64, 32, 16, 32, 2, 4
    N = 2 * P + 1

    key = jax.random.PRNGKey(0)
    k1, k2, k3, k4, k5, k6, k7, k8 = jax.random.split(key, 8)

    embedding = jax.random.normal(k1, (V, D), jnp.float32)
    embedding = embedding.at[PAD].set(0.0)   # pad row is zero (as in GloveTokenizer)

    params = {
        "embedding": embedding,
        "weight_matrix": jax.random.normal(k2, (V, V), jnp.float32),
        "public_edge_weight": jax.random.normal(k3, (1, 1), jnp.float32),
        "information_rate": jax.random.uniform(k4, (V, 1), jnp.float32),
        "linear_weight": 0.1 * jax.random.normal(k5, (C, D), jnp.float32),
        "linear_bias": 0.1 * jax.random.normal(k6, (C,), jnp.float32),
    }

    # deterministic batch with varying sequence lengths (trailing PAD)
    tok = np.array(jax.random.randint(k7, (B, L), 2, V), dtype=np.int32)
    seq_lens = [L - ((3 * bi) % 12) for bi in range(B)]
    node_np = tok.copy()
    for bi in range(B):
        node_np[bi, seq_lens[bi]:] = PAD

    nbr_np = np.full((B, L, N), PAD, dtype=np.int32)
    for bi in range(B):
        sl = seq_lens[bi]
        for i in range(sl):
            col = 0
            for j in range(-P, P + 1):
                if 0 <= i + j < sl:
                    nbr_np[bi, i, col] = node_np[bi, i + j]
                    col += 1

    node_sets = jnp.asarray(node_np)
    neighbor_sets = jnp.asarray(nbr_np)
    public_edge_mask = jax.random.bernoulli(k8, 0.3, (B, L, N))

    y_ref = _reference_forward(params, node_sets, neighbor_sets, public_edge_mask)

    # default tiling (single L tile for this small demo)
    y = text_level_gnn_forward(params, node_sets, neighbor_sets, public_edge_mask)
    y = jax.block_until_ready(y)
    np.testing.assert_allclose(np.asarray(y), np.asarray(y_ref), rtol=1e-5, atol=1e-5)

    # also exercise the multi-L-tile reduction path (resident accumulator across
    # the "arbitrary" grid axis) with a smaller L tile
    y2 = text_level_gnn_forward(params, node_sets, neighbor_sets, public_edge_mask,
                                tb=8, tl=16)
    y2 = jax.block_until_ready(y2)
    np.testing.assert_allclose(np.asarray(y2), np.asarray(y_ref), rtol=1e-5, atol=1e-5)

    print("KERNEL_OK")
</pallas_src>

<mosaic_0001>
module attributes {stable_mosaic.version = 11 : i64} {
  func.func @kernel(%arg0: i32, %arg1: i32, %arg2: memref<8x5x32x32xf32, #tpu.memory_space<vmem>>, %arg3: memref<8x32x33xf32, #tpu.memory_space<vmem>>, %arg4: memref<32x128xf32, #tpu.memory_space<vmem>>, %arg5: memref<1x128xf32, #tpu.memory_space<vmem>>, %arg6: memref<8x128xf32, #tpu.memory_space<vmem>>, %arg7: memref<8x8x32xf32, #tpu.memory_space<vmem>>) attributes {dimension_semantics = [#tpu.dimension_semantics<parallel>, #tpu.dimension_semantics<arbitrary>], iteration_bounds = array<i64: 2, 1>, scalar_prefetch = 0 : i64, scratch_operands = 1 : i64, tpu.core_type = #tpu.core_type<tc>, window_params = [{transform_indices = @transform_0, window_bounds = array<i64: 8, 5, 32, 32>}, {transform_indices = @transform_1, window_bounds = array<i64: 8, 32, 33>}, {pipeline_mode = #tpu.pipeline_mode<synchronous>, transform_indices = @transform_2, window_bounds = array<i64: 32, 128>}, {pipeline_mode = #tpu.pipeline_mode<synchronous>, transform_indices = @transform_3, window_bounds = array<i64: 1, 128>}, {transform_indices = @transform_4, window_bounds = array<i64: 8, 128>}]} {
    %c0_i32 = arith.constant 0 : i32
    %0 = arith.cmpi eq, %arg1, %c0_i32 : i32
    %1 = arith.extui %0 : i1 to i32
    %c0_i32_0 = arith.constant 0 : i32
    %2 = arith.cmpi ne, %1, %c0_i32_0 : i32
    scf.if %2 {
      %cst_150 = arith.constant 0.000000e+00 : f32
      %178 = vector.broadcast %cst_150 : f32 to vector<8x8x32xf32>
      %c0_151 = arith.constant 0 : index
      %c0_152 = arith.constant 0 : index
      %c0_153 = arith.constant 0 : index
      %179 = vector.load %arg7[%c0_151, %c0_152, %c0_153] : memref<8x8x32xf32, #tpu.memory_space<vmem>>, vector<8x8x32xf32>
      tpu.vector_store %arg7[%c0_151, %c0_152, %c0_153], %178 {strides = array<i32>} : memref<8x8x32xf32, #tpu.memory_space<vmem>>, vector<8x8x32xf32>,
    } else {
    }
    %c0 = arith.constant 0 : index
    %c0_1 = arith.constant 0 : index
    %c0_2 = arith.constant 0 : index
    %c0_3 = arith.constant 0 : index
    %3 = vector.load %arg2[%c0, %c0_1, %c0_2, %c0_3] : memref<8x5x32x32xf32, #tpu.memory_space<vmem>>, vector<8x1x8x32xf32>
    %4 = vector.shape_cast %3 : vector<8x1x8x32xf32> to vector<8x8x32xf32>
    %cst = arith.constant 0.000000e+00 : f32
    %5 = vector.broadcast %cst : f32 to vector<8x8x32xf32>
    %6 = arith.cmpf oeq, %4, %5 : vector<8x8x32xf32>
    %cst_4 = arith.constant -9.99999984E+17 : f32
    %7 = vector.broadcast %cst_4 : f32 to vector<8x8x32xf32>
    %8 = arith.select %6, %7, %4 : vector<8x8x32xi1>, vector<8x8x32xf32>
    %c0_5 = arith.constant 0 : index
    %c1 = arith.constant 1 : index
    %c0_6 = arith.constant 0 : index
    %c0_7 = arith.constant 0 : index
    %9 = vector.load %arg2[%c0_5, %c1, %c0_6, %c0_7] : memref<8x5x32x32xf32, #tpu.memory_space<vmem>>, vector<8x1x8x32xf32>
    %10 = vector.shape_cast %9 : vector<8x1x8x32xf32> to vector<8x8x32xf32>
    %cst_8 = arith.constant 0.000000e+00 : f32
    %11 = vector.broadcast %cst_8 : f32 to vector<8x8x32xf32>
    %12 = arith.cmpf oeq, %10, %11 : vector<8x8x32xf32>
    %cst_9 = arith.constant -9.99999984E+17 : f32
    %13 = vector.broadcast %cst_9 : f32 to vector<8x8x32xf32>
    %14 = arith.select %12, %13, %10 : vector<8x8x32xi1>, vector<8x8x32xf32>
    %15 = arith.maximumf %8, %14 : vector<8x8x32xf32>
    %c0_10 = arith.constant 0 : index
    %c2 = arith.constant 2 : index
    %c0_11 = arith.constant 0 : index
    %c0_12 = arith.constant 0 : index
    %16 = vector.load %arg2[%c0_10, %c2, %c0_11, %c0_12] : memref<8x5x32x32xf32, #tpu.memory_space<vmem>>, vector<8x1x8x32xf32>
    %17 = vector.shape_cast %16 : vector<8x1x8x32xf32> to vector<8x8x32xf32>
    %cst_13 = arith.constant 0.000000e+00 : f32
    %18 = vector.broadcast %cst_13 : f32 to vector<8x8x32xf32>
    %19 = arith.cmpf oeq, %17, %18 : vector<8x8x32xf32>
    %cst_14 = arith.constant -9.99999984E+17 : f32
    %20 = vector.broadcast %cst_14 : f32 to vector<8x8x32xf32>
    %21 = arith.select %19, %20, %17 : vector<8x8x32xi1>, vector<8x8x32xf32>
    %22 = arith.maximumf %15, %21 : vector<8x8x32xf32>
    %c0_15 = arith.constant 0 : index
    %c3 = arith.constant 3 : index
    %c0_16 = arith.constant 0 : index
    %c0_17 = arith.constant 0 : index
    %23 = vector.load %arg2[%c0_15, %c3, %c0_16, %c0_17] : memref<8x5x32x32xf32, #tpu.memory_space<vmem>>, vector<8x1x8x32xf32>
    %24 = vector.shape_cast %23 : vector<8x1x8x32xf32> to vector<8x8x32xf32>
    %cst_18 = arith.constant 0.000000e+00 : f32
    %25 = vector.broadcast %cst_18 : f32 to vector<8x8x32xf32>
    %26 = arith.cmpf oeq, %24, %25 : vector<8x8x32xf32>
    %cst_19 = arith.constant -9.99999984E+17 : f32
    %27 = vector.broadcast %cst_19 : f32 to vector<8x8x32xf32>
    %28 = arith.select %26, %27, %24 : vector<8x8x32xi1>, vector<8x8x32xf32>
    %29 = arith.maximumf %22, %28 : vector<8x8x32xf32>
    %c0_20 = arith.constant 0 : index
    %c4 = arith.constant 4 : index
    %c0_21 = arith.constant 0 : index
    %c0_22 = arith.constant 0 : index
    %30 = vector.load %arg2[%c0_20, %c4, %c0_21, %c0_22] : memref<8x5x32x32xf32, #tpu.memory_space<vmem>>, vector<8x1x8x32xf32>
    %31 = vector.shape_cast %30 : vector<8x1x8x32xf32> to vector<8x8x32xf32>
    %cst_23 = arith.constant 0.000000e+00 : f32
    %32 = vector.broadcast %cst_23 : f32 to vector<8x8x32xf32>
    %33 = arith.cmpf oeq, %31, %32 : vector<8x8x32xf32>
    %cst_24 = arith.constant -9.99999984E+17 : f32
    %34 = vector.broadcast %cst_24 : f32 to vector<8x8x32xf32>
    %35 = arith.select %33, %34, %31 : vector<8x8x32xi1>, vector<8x8x32xf32>
    %36 = arith.maximumf %29, %35 : vector<8x8x32xf32>
    %c0_25 = arith.constant 0 : index
    %c0_26 = arith.constant 0 : index
    %c0_27 = arith.constant 0 : index
    %37 = vector.load %arg3[%c0_25, %c0_26, %c0_27] : memref<8x32x33xf32, #tpu.memory_space<vmem>>, vector<8x8x33xf32>
    %38 = vector.extract_strided_slice %37 {offsets = [0, 0, 0], sizes = [8, 8, 32], strides = [1, 1, 1]} : vector<8x8x33xf32> to vector<8x8x32xf32>
    %39 = vector.extract_strided_slice %37 {offsets = [0, 0, 32], sizes = [8, 8, 1], strides = [1, 1, 1]} : vector<8x8x33xf32> to vector<8x8x1xf32>
    %c0_28 = arith.constant 0 : index
    %c0_29 = arith.constant 0 : index
    %c0_30 = arith.constant 0 : index
    %40 = vector.load %arg7[%c0_28, %c0_29, %c0_30] : memref<8x8x32xf32, #tpu.memory_space<vmem>>, vector<8x8x32xf32>
    %41 = vector.broadcast %39 : vector<8x8x1xf32> to vector<8x8x32xf32>
    %42 = arith.mulf %41, %36 : vector<8x8x32xf32>
    %43 = arith.addf %42, %38 : vector<8x8x32xf32>
    %44 = arith.addf %40, %43 : vector<8x8x32xf32>
    %c0_31 = arith.constant 0 : index
    %c0_32 = arith.constant 0 : index
    %c0_33 = arith.constant 0 : index
    %45 = vector.load %arg7[%c0_31, %c0_32, %c0_33] : memref<8x8x32xf32, #tpu.memory_space<vmem>>, vector<8x8x32xf32>
    tpu.vector_store %arg7[%c0_31, %c0_32, %c0_33], %44 {strides = array<i32>} : memref<8x8x32xf32, #tpu.memory_space<vmem>>, vector<8x8x32xf32>,
    %c0_34 = arith.constant 0 : index
    %c0_35 = arith.constant 0 : index
    %c8 = arith.constant 8 : index
    %c0_36 = arith.constant 0 : index
    %46 = vector.load %arg2[%c0_34, %c0_35, %c8, %c0_36] : memref<8x5x32x32xf32, #tpu.memory_space<vmem>>, vector<8x1x8x32xf32>
    %47 = vector.shape_cast %46 : vector<8x1x8x32xf32> to vector<8x8x32xf32>
    %cst_37 = arith.constant 0.000000e+00 : f32
    %48 = vector.broadcast %cst_37 : f32 to vector<8x8x32xf32>
    %49 = arith.cmpf oeq, %47, %48 : vector<8x8x32xf32>
    %cst_38 = arith.constant -9.99999984E+17 : f32
    %50 = vector.broadcast %cst_38 : f32 to vector<8x8x32xf32>
    %51 = arith.select %49, %50, %47 : vector<8x8x32xi1>, vector<8x8x32xf32>
    %c0_39 = arith.constant 0 : index
    %c1_40 = arith.constant 1 : index
    %c8_41 = arith.constant 8 : index
    %c0_42 = arith.constant 0 : index
    %52 = vector.load %arg2[%c0_39, %c1_40, %c8_41, %c0_42] : memref<8x5x32x32xf32, #tpu.memory_space<vmem>>, vector<8x1x8x32xf32>
    %53 = vector.shape_cast %52 : vector<8x1x8x32xf32> to vector<8x8x32xf32>
    %cst_43 = arith.constant 0.000000e+00 : f32
    %54 = vector.broadcast %cst_43 : f32 to vector<8x8x32xf32>
    %55 = arith.cmpf oeq, %53, %54 : vector<8x8x32xf32>
    %cst_44 = arith.constant -9.99999984E+17 : f32
    %56 = vector.broadcast %cst_44 : f32 to vector<8x8x32xf32>
    %57 = arith.select %55, %56, %53 : vector<8x8x32xi1>, vector<8x8x32xf32>
    %58 = arith.maximumf %51, %57 : vector<8x8x32xf32>
    %c0_45 = arith.constant 0 : index
    %c2_46 = arith.constant 2 : index
    %c8_47 = arith.constant 8 : index
    %c0_48 = arith.constant 0 : index
    %59 = vector.load %arg2[%c0_45, %c2_46, %c8_47, %c0_48] : memref<8x5x32x32xf32, #tpu.memory_space<vmem>>, vector<8x1x8x32xf32>
    %60 = vector.shape_cast %59 : vector<8x1x8x32xf32> to vector<8x8x32xf32>
    %cst_49 = arith.constant 0.000000e+00 : f32
    %61 = vector.broadcast %cst_49 : f32 to vector<8x8x32xf32>
    %62 = arith.cmpf oeq, %60, %61 : vector<8x8x32xf32>
    %cst_50 = arith.constant -9.99999984E+17 : f32
    %63 = vector.broadcast %cst_50 : f32 to vector<8x8x32xf32>
    %64 = arith.select %62, %63, %60 : vector<8x8x32xi1>, vector<8x8x32xf32>
    %65 = arith.maximumf %58, %64 : vector<8x8x32xf32>
    %c0_51 = arith.constant 0 : index
    %c3_52 = arith.constant 3 : index
    %c8_53 = arith.constant 8 : index
    %c0_54 = arith.constant 0 : index
    %66 = vector.load %arg2[%c0_51, %c3_52, %c8_53, %c0_54] : memref<8x5x32x32xf32, #tpu.memory_space<vmem>>, vector<8x1x8x32xf32>
    %67 = vector.shape_cast %66 : vector<8x1x8x32xf32> to vector<8x8x32xf32>
    %cst_55 = arith.constant 0.000000e+00 : f32
    %68 = vector.broadcast %cst_55 : f32 to vector<8x8x32xf32>
    %69 = arith.cmpf oeq, %67, %68 : vector<8x8x32xf32>
    %cst_56 = arith.constant -9.99999984E+17 : f32
    %70 = vector.broadcast %cst_56 : f32 to vector<8x8x32xf32>
    %71 = arith.select %69, %70, %67 : vector<8x8x32xi1>, vector<8x8x32xf32>
    %72 = arith.maximumf %65, %71 : vector<8x8x32xf32>
    %c0_57 = arith.constant 0 : index
    %c4_58 = arith.constant 4 : index
    %c8_59 = arith.constant 8 : index
    %c0_60 = arith.constant 0 : index
    %73 = vector.load %arg2[%c0_57, %c4_58, %c8_59, %c0_60] : memref<8x5x32x32xf32, #tpu.memory_space<vmem>>, vector<8x1x8x32xf32>
    %74 = vector.shape_cast %73 : vector<8x1x8x32xf32> to vector<8x8x32xf32>
    %cst_61 = arith.constant 0.000000e+00 : f32
    %75 = vector.broadcast %cst_61 : f32 to vector<8x8x32xf32>
    %76 = arith.cmpf oeq, %74, %75 : vector<8x8x32xf32>
    %cst_62 = arith.constant -9.99999984E+17 : f32
    %77 = vector.broadcast %cst_62 : f32 to vector<8x8x32xf32>
    %78 = arith.select %76, %77, %74 : vector<8x8x32xi1>, vector<8x8x32xf32>
    %79 = arith.maximumf %72, %78 : vector<8x8x32xf32>
    %c0_63 = arith.constant 0 : index
    %c8_64 = arith.constant 8 : index
    %c0_65 = arith.constant 0 : index
    %80 = vector.load %arg3[%c0_63, %c8_64, %c0_65] : memref<8x32x33xf32, #tpu.memory_space<vmem>>, vector<8x8x33xf32>
    %81 = vector.extract_strided_slice %80 {offsets = [0, 0, 0], sizes = [8, 8, 32], strides = [1, 1, 1]} : vector<8x8x33xf32> to vector<8x8x32xf32>
    %82 = vector.extract_strided_slice %80 {offsets = [0, 0, 32], sizes = [8, 8, 1], strides = [1, 1, 1]} : vector<8x8x33xf32> to vector<8x8x1xf32>
    %c0_66 = arith.constant 0 : index
    %c0_67 = arith.constant 0 : index
    %c0_68 = arith.constant 0 : index
    %83 = vector.load %arg7[%c0_66, %c0_67, %c0_68] : memref<8x8x32xf32, #tpu.memory_space<vmem>>, vector<8x8x32xf32>
    %84 = vector.broadcast %82 : vector<8x8x1xf32> to vector<8x8x32xf32>
    %85 = arith.mulf %84, %79 : vector<8x8x32xf32>
    %86 = arith.addf %85, %81 : vector<8x8x32xf32>
    %87 = arith.addf %83, %86 : vector<8x8x32xf32>
    %c0_69 = arith.constant 0 : index
    %c0_70 = arith.constant 0 : index
    %c0_71 = arith.constant 0 : index
    %88 = vector.load %arg7[%c0_69, %c0_70, %c0_71] : memref<8x8x32xf32, #tpu.memory_space<vmem>>, vector<8x8x32xf32>
    tpu.vector_store %arg7[%c0_69, %c0_70, %c0_71], %87 {strides = array<i32>} : memref<8x8x32xf32, #tpu.memory_space<vmem>>, vector<8x8x32xf32>,
    %c0_72 = arith.constant 0 : index
    %c0_73 = arith.constant 0 : index
    %c16 = arith.constant 16 : index
    %c0_74 = arith.constant 0 : index
    %89 = vector.load %arg2[%c0_72, %c0_73, %c16, %c0_74] : memref<8x5x32x32xf32, #tpu.memory_space<vmem>>, vector<8x1x8x32xf32>
    %90 = vector.shape_cast %89 : vector<8x1x8x32xf32> to vector<8x8x32xf32>
    %cst_75 = arith.constant 0.000000e+00 : f32
    %91 = vector.broadcast %cst_75 : f32 to vector<8x8x32xf32>
    %92 = arith.cmpf oeq, %90, %91 : vector<8x8x32xf32>
    %cst_76 = arith.constant -9.99999984E+17 : f32
    %93 = vector.broadcast %cst_76 : f32 to vector<8x8x32xf32>
    %94 = arith.select %92, %93, %90 : vector<8x8x32xi1>, vector<8x8x32xf32>
    %c0_77 = arith.constant 0 : index
    %c1_78 = arith.constant 1 : index
    %c16_79 = arith.constant 16 : index
    %c0_80 = arith.constant 0 : index
    %95 = vector.load %arg2[%c0_77, %c1_78, %c16_79, %c0_80] : memref<8x5x32x32xf32, #tpu.memory_space<vmem>>, vector<8x1x8x32xf32>
    %96 = vector.shape_cast %95 : vector<8x1x8x32xf32> to vector<8x8x32xf32>
    %cst_81 = arith.constant 0.000000e+00 : f32
    %97 = vector.broadcast %cst_81 : f32 to vector<8x8x32xf32>
    %98 = arith.cmpf oeq, %96, %97 : vector<8x8x32xf32>
    %cst_82 = arith.constant -9.99999984E+17 : f32
    %99 = vector.broadcast %cst_82 : f32 to vector<8x8x32xf32>
    %100 = arith.select %98, %99, %96 : vector<8x8x32xi1>, vector<8x8x32xf32>
    %101 = arith.maximumf %94, %100 : vector<8x8x32xf32>
    %c0_83 = arith.constant 0 : index
    %c2_84 = arith.constant 2 : index
    %c16_85 = arith.constant 16 : index
    %c0_86 = arith.constant 0 : index
    %102 = vector.load %arg2[%c0_83, %c2_84, %c16_85, %c0_86] : memref<8x5x32x32xf32, #tpu.memory_space<vmem>>, vector<8x1x8x32xf32>
    %103 = vector.shape_cast %102 : vector<8x1x8x32xf32> to vector<8x8x32xf32>
    %cst_87 = arith.constant 0.000000e+00 : f32
    %104 = vector.broadcast %cst_87 : f32 to vector<8x8x32xf32>
    %105 = arith.cmpf oeq, %103, %104 : vector<8x8x32xf32>
    %cst_88 = arith.constant -9.99999984E+17 : f32
    %106 = vector.broadcast %cst_88 : f32 to vector<8x8x32xf32>
    %107 = arith.select %105, %106, %103 : vector<8x8x32xi1>, vector<8x8x32xf32>
    %108 = arith.maximumf %101, %107 : vector<8x8x32xf32>
    %c0_89 = arith.constant 0 : index
    %c3_90 = arith.constant 3 : index
    %c16_91 = arith.constant 16 : index
    %c0_92 = arith.constant 0 : index
    %109 = vector.load %arg2[%c0_89, %c3_90, %c16_91, %c0_92] : memref<8x5x32x32xf32, #tpu.memory_space<vmem>>, vector<8x1x8x32xf32>
    %110 = vector.shape_cast %109 : vector<8x1x8x32xf32> to vector<8x8x32xf32>
    %cst_93 = arith.constant 0.000000e+00 : f32
    %111 = vector.broadcast %cst_93 : f32 to vector<8x8x32xf32>
    %112 = arith.cmpf oeq, %110, %111 : vector<8x8x32xf32>
    %cst_94 = arith.constant -9.99999984E+17 : f32
    %113 = vector.broadcast %cst_94 : f32 to vector<8x8x32xf32>
    %114 = arith.select %112, %113, %110 : vector<8x8x32xi1>, vector<8x8x32xf32>
    %115 = arith.maximumf %108, %114 : vector<8x8x32xf32>
    %c0_95 = arith.constant 0 : index
    %c4_96 = arith.constant 4 : index
    %c16_97 = arith.constant 16 : index
    %c0_98 = arith.constant 0 : index
    %116 = vector.load %arg2[%c0_95, %c4_96, %c16_97, %c0_98] : memref<8x5x32x32xf32, #tpu.memory_space<vmem>>, vector<8x1x8x32xf32>
    %117 = vector.shape_cast %116 : vector<8x1x8x32xf32> to vector<8x8x32xf32>
    %cst_99 = arith.constant 0.000000e+00 : f32
    %118 = vector.broadcast %cst_99 : f32 to vector<8x8x32xf32>
    %119 = arith.cmpf oeq, %117, %118 : vector<8x8x32xf32>
    %cst_100 = arith.constant -9.99999984E+17 : f32
    %120 = vector.broadcast %cst_100 : f32 to vector<8x8x32xf32>
    %121 = arith.select %119, %120, %117 : vector<8x8x32xi1>, vector<8x8x32xf32>
    %122 = arith.maximumf %115, %121 : vector<8x8x32xf32>
    %c0_101 = arith.constant 0 : index
    %c16_102 = arith.constant 16 : index
    %c0_103 = arith.constant 0 : index
    %123 = vector.load %arg3[%c0_101, %c16_102, %c0_103] : memref<8x32x33xf32, #tpu.memory_space<vmem>>, vector<8x8x33xf32>
    %124 = vector.extract_strided_slice %123 {offsets = [0, 0, 0], sizes = [8, 8, 32], strides = [1, 1, 1]} : vector<8x8x33xf32> to vector<8x8x32xf32>
    %125 = vector.extract_strided_slice %123 {offsets = [0, 0, 32], sizes = [8, 8, 1], strides = [1, 1, 1]} : vector<8x8x33xf32> to vector<8x8x1xf32>
    %c0_104 = arith.constant 0 : index
    %c0_105 = arith.constant 0 : index
    %c0_106 = arith.constant 0 : index
    %126 = vector.load %arg7[%c0_104, %c0_105, %c0_106] : memref<8x8x32xf32, #tpu.memory_space<vmem>>, vector<8x8x32xf32>
    %127 = vector.broadcast %125 : vector<8x8x1xf32> to vector<8x8x32xf32>
    %128 = arith.mulf %127, %122 : vector<8x8x32xf32>
    %129 = arith.addf %128, %124 : vector<8x8x32xf32>
    %130 = arith.addf %126, %129 : vector<8x8x32xf32>
    %c0_107 = arith.constant 0 : index
    %c0_108 = arith.constant 0 : index
    %c0_109 = arith.constant 0 : index
    %131 = vector.load %arg7[%c0_107, %c0_108, %c0_109] : memref<8x8x32xf32, #tpu.memory_space<vmem>>, vector<8x8x32xf32>
    tpu.vector_store %arg7[%c0_107, %c0_108, %c0_109], %130 {strides = array<i32>} : memref<8x8x32xf32, #tpu.memory_space<vmem>>, vector<8x8x32xf32>,
    %c0_110 = arith.constant 0 : index
    %c0_111 = arith.constant 0 : index
    %c24 = arith.constant 24 : index
    %c0_112 = arith.constant 0 : index
    %132 = vector.load %arg2[%c0_110, %c0_111, %c24, %c0_112] : memref<8x5x32x32xf32, #tpu.memory_space<vmem>>, vector<8x1x8x32xf32>
    %133 = vector.shape_cast %132 : vector<8x1x8x32xf32> to vector<8x8x32xf32>
    %cst_113 = arith.constant 0.000000e+00 : f32
    %134 = vector.broadcast %cst_113 : f32 to vector<8x8x32xf32>
    %135 = arith.cmpf oeq, %133, %134 : vector<8x8x32xf32>
    %cst_114 = arith.constant -9.99999984E+17 : f32
    %136 = vector.broadcast %cst_114 : f32 to vector<8x8x32xf32>
    %137 = arith.select %135, %136, %133 : vector<8x8x32xi1>, vector<8x8x32xf32>
    %c0_115 = arith.constant 0 : index
    %c1_116 = arith.constant 1 : index
    %c24_117 = arith.constant 24 : index
    %c0_118 = arith.constant 0 : index
    %138 = vector.load %arg2[%c0_115, %c1_116, %c24_117, %c0_118] : memref<8x5x32x32xf32, #tpu.memory_space<vmem>>, vector<8x1x8x32xf32>
    %139 = vector.shape_cast %138 : vector<8x1x8x32xf32> to vector<8x8x32xf32>
    %cst_119 = arith.constant 0.000000e+00 : f32
    %140 = vector.broadcast %cst_119 : f32 to vector<8x8x32xf32>
    %141 = arith.cmpf oeq, %139, %140 : vector<8x8x32xf32>
    %cst_120 = arith.constant -9.99999984E+17 : f32
    %142 = vector.broadcast %cst_120 : f32 to vector<8x8x32xf32>
    %143 = arith.select %141, %142, %139 : vector<8x8x32xi1>, vector<8x8x32xf32>
    %144 = arith.maximumf %137, %143 : vector<8x8x32xf32>
    %c0_121 = arith.constant 0 : index
    %c2_122 = arith.constant 2 : index
    %c24_123 = arith.constant 24 : index
    %c0_124 = arith.constant 0 : index
    %145 = vector.load %arg2[%c0_121, %c2_122, %c24_123, %c0_124] : memref<8x5x32x32xf32, #tpu.memory_space<vmem>>, vector<8x1x8x32xf32>
    %146 = vector.shape_cast %145 : vector<8x1x8x32xf32> to vector<8x8x32xf32>
    %cst_125 = arith.constant 0.000000e+00 : f32
    %147 = vector.broadcast %cst_125 : f32 to vector<8x8x32xf32>
    %148 = arith.cmpf oeq, %146, %147 : vector<8x8x32xf32>
    %cst_126 = arith.constant -9.99999984E+17 : f32
    %149 = vector.broadcast %cst_126 : f32 to vector<8x8x32xf32>
    %150 = arith.select %148, %149, %146 : vector<8x8x32xi1>, vector<8x8x32xf32>
    %151 = arith.maximumf %144, %150 : vector<8x8x32xf32>
    %c0_127 = arith.constant 0 : index
    %c3_128 = arith.constant 3 : index
    %c24_129 = arith.constant 24 : index
    %c0_130 = arith.constant 0 : index
    %152 = vector.load %arg2[%c0_127, %c3_128, %c24_129, %c0_130] : memref<8x5x32x32xf32, #tpu.memory_space<vmem>>, vector<8x1x8x32xf32>
    %153 = vector.shape_cast %152 : vector<8x1x8x32xf32> to vector<8x8x32xf32>
    %cst_131 = arith.constant 0.000000e+00 : f32
    %154 = vector.broadcast %cst_131 : f32 to vector<8x8x32xf32>
    %155 = arith.cmpf oeq, %153, %154 : vector<8x8x32xf32>
    %cst_132 = arith.constant -9.99999984E+17 : f32
    %156 = vector.broadcast %cst_132 : f32 to vector<8x8x32xf32>
    %157 = arith.select %155, %156, %153 : vector<8x8x32xi1>, vector<8x8x32xf32>
    %158 = arith.maximumf %151, %157 : vector<8x8x32xf32>
    %c0_133 = arith.constant 0 : index
    %c4_134 = arith.constant 4 : index
    %c24_135 = arith.constant 24 : index
    %c0_136 = arith.constant 0 : index
    %159 = vector.load %arg2[%c0_133, %c4_134, %c24_135, %c0_136] : memref<8x5x32x32xf32, #tpu.memory_space<vmem>>, vector<8x1x8x32xf32>
    %160 = vector.shape_cast %159 : vector<8x1x8x32xf32> to vector<8x8x32xf32>
    %cst_137 = arith.constant 0.000000e+00 : f32
    %161 = vector.broadcast %cst_137 : f32 to vector<8x8x32xf32>
    %162 = arith.cmpf oeq, %160, %161 : vector<8x8x32xf32>
    %cst_138 = arith.constant -9.99999984E+17 : f32
    %163 = vector.broadcast %cst_138 : f32 to vector<8x8x32xf32>
    %164 = arith.select %162, %163, %160 : vector<8x8x32xi1>, vector<8x8x32xf32>
    %165 = arith.maximumf %158, %164 : vector<8x8x32xf32>
    %c0_139 = arith.constant 0 : index
    %c24_140 = arith.constant 24 : index
    %c0_141 = arith.constant 0 : index
    %166 = vector.load %arg3[%c0_139, %c24_140, %c0_141] : memref<8x32x33xf32, #tpu.memory_space<vmem>>, vector<8x8x33xf32>
    %167 = vector.extract_strided_slice %166 {offsets = [0, 0, 0], sizes = [8, 8, 32], strides = [1, 1, 1]} : vector<8x8x33xf32> to vector<8x8x32xf32>
    %168 = vector.extract_strided_slice %166 {offsets = [0, 0, 32], sizes = [8, 8, 1], strides = [1, 1, 1]} : vector<8x8x33xf32> to vector<8x8x1xf32>
    %c0_142 = arith.constant 0 : index
    %c0_143 = arith.constant 0 : index
    %c0_144 = arith.constant 0 : index
    %169 = vector.load %arg7[%c0_142, %c0_143, %c0_144] : memref<8x8x32xf32, #tpu.memory_space<vmem>>, vector<8x8x32xf32>
    %170 = vector.broadcast %168 : vector<8x8x1xf32> to vector<8x8x32xf32>
    %171 = arith.mulf %170, %165 : vector<8x8x32xf32>
    %172 = arith.addf %171, %167 : vector<8x8x32xf32>
    %173 = arith.addf %169, %172 : vector<8x8x32xf32>
    %c0_145 = arith.constant 0 : index
    %c0_146 = arith.constant 0 : index
    %c0_147 = arith.constant 0 : index
    %174 = vector.load %arg7[%c0_145, %c0_146, %c0_147] : memref<8x8x32xf32, #tpu.memory_space<vmem>>, vector<8x8x32xf32>
    tpu.vector_store %arg7[%c0_145, %c0_146, %c0_147], %173 {strides = array<i32>} : memref<8x8x32xf32, #tpu.memory_space<vmem>>, vector<8x8x32xf32>,
    %c0_i32_148 = arith.constant 0 : i32
    %175 = arith.cmpi eq, %arg1, %c0_i32_148 : i32
    %176 = arith.extui %175 : i1 to i32
    %c0_i32_149 = arith.constant 0 : i32
    %177 = arith.cmpi ne, %176, %c0_i32_149 : i32
    scf.if %177 {
      %c0_150 = arith.constant 0 : index
      %c0_151 = arith.constant 0 : index
      %c0_152 = arith.constant 0 : index
      %178 = vector.load %arg7[%c0_150, %c0_151, %c0_152] : memref<8x8x32xf32, #tpu.memory_space<vmem>>, vector<8x8x32xf32>
      %cst_153 = arith.constant dense<0.000000e+00> : vector<8x32xf32>
      %179 = vector.multi_reduction <add>, %178, %cst_153 [1] : vector<8x8x32xf32> to vector<8x32xf32>
      %c0_154 = arith.constant 0 : index
      %c0_155 = arith.constant 0 : index
      %180 = vector.load %arg4[%c0_154, %c0_155] : memref<32x128xf32, #tpu.memory_space<vmem>>, vector<32x128xf32>
      %cst_156 = arith.constant dense<0.000000e+00> : vector<8x128xf32>
      %181 = tpu.matmul %179, %180, %cst_156 {dimension_numbers = #tpu.dot_dimension_numbers<[1], [0], [0], [1], [0, 0, 1, 1], [], []>} : vector<8x32xf32>, vector<32x128xf32>, vector<8x128xf32> -> vector<8x128xf32>
      %c0_157 = arith.constant 0 : index
      %c0_158 = arith.constant 0 : index
      %182 = vector.load %arg5[%c0_157, %c0_158] : memref<1x128xf32, #tpu.memory_space<vmem>>, vector<1x128xf32>
      %183 = vector.broadcast %182 : vector<1x128xf32> to vector<8x128xf32>
      %184 = arith.addf %181, %183 : vector<8x128xf32>
      %cst_159 = arith.constant 0.000000e+00 : f32
      %185 = vector.broadcast %cst_159 : f32 to vector<8x128xf32>
      %186 = arith.maximumf %184, %185 : vector<8x128xf32>
      %187 = tpu.iota {dimensions = array<i32: 1>} : vector<8x128xi32>
      %c4_i32 = arith.constant 4 : i32
      %188 = vector.broadcast %c4_i32 : i32 to vector<8x128xi32>
      %189 = arith.cmpi slt, %187, %188 : vector<8x128xi32>
      %cst_160 = arith.constant -1.000000e+30 : f32
      %190 = vector.broadcast %cst_160 : f32 to vector<8x128xf32>
      %191 = arith.select %189, %186, %190 : vector<8x128xi1>, vector<8x128xf32>
      %cst_161 = arith.constant dense<0xFF800000> : vector<8xf32>
      %192 = vector.multi_reduction <maximumf>, %191, %cst_161 [1] : vector<8x128xf32> to vector<8xf32>
      %193 = vector.shape_cast %192 : vector<8xf32> to vector<8x1xf32>
      %194 = vector.broadcast %193 : vector<8x1xf32> to vector<8x128xf32>
      %195 = arith.subf %191, %194 : vector<8x128xf32>
      %196 = math.exp %195 : vector<8x128xf32>
      %cst_162 = arith.constant dense<0.000000e+00> : vector<8xf32>
      %197 = vector.multi_reduction <add>, %196, %cst_162 [1] : vector<8x128xf32> to vector<8xf32>
      %198 = vector.shape_cast %197 : vector<8xf32> to vector<8x1xf32>
      %199 = vector.broadcast %198 : vector<8x1xf32> to vector<8x128xf32>
      %200 = arith.divf %196, %199 : vector<8x128xf32>
      %c0_163 = arith.constant 0 : index
      %c0_164 = arith.constant 0 : index
      %201 = vector.load %arg6[%c0_163, %c0_164] : memref<8x128xf32, #tpu.memory_space<vmem>>, vector<8x128xf32>
      tpu.vector_store %arg6[%c0_163, %c0_164], %200 {strides = array<i32>} : memref<8x128xf32, #tpu.memory_space<vmem>>, vector<8x128xf32>,
    } else {
    }
    return
  }
  func.func @transform_0(%arg0: i32, %arg1: i32) -> (i32, i32, i32, i32) {
    %c0_i32 = arith.constant 0 : i32
    %c0_i32_0 = arith.constant 0 : i32
    %c0_i32_1 = arith.constant 0 : i32
    return %arg0, %c0_i32, %arg1, %c0_i32_0 : i32, i32, i32, i32
  }
  func.func @transform_1(%arg0: i32, %arg1: i32) -> (i32, i32, i32) {
    %c0_i32 = arith.constant 0 : i32
    %c0_i32_0 = arith.constant 0 : i32
    return %arg0, %arg1, %c0_i32 : i32, i32, i32
  }
  func.func @transform_2(%arg0: i32, %arg1: i32) -> (i32, i32) {
    %c0_i32 = arith.constant 0 : i32
    %c0_i32_0 = arith.constant 0 : i32
    %c0_i32_1 = arith.constant 0 : i32
    return %c0_i32, %c0_i32_0 : i32, i32
  }
  func.func @transform_3(%arg0: i32, %arg1: i32) -> (i32, i32) {
    %c0_i32 = arith.constant 0 : i32
    %c0_i32_0 = arith.constant 0 : i32
    %c0_i32_1 = arith.constant 0 : i32
    return %c0_i32, %c0_i32_0 : i32, i32
  }
  func.func @transform_4(%arg0: i32, %arg1: i32) -> (i32, i32) {
    %c0_i32 = arith.constant 0 : i32
    %c0_i32_0 = arith.constant 0 : i32
    return %arg0, %c0_i32 : i32, i32
  }
}

</mosaic_0001>

<bundles_post_ra>
// kernel: tpu_custom_call.1
= control target key start
LH: loop header
LB: loop body
LE: loop exit
PB: predicated region body
PF: predicated region fallthrough
CT: control target
= control target key end

     0   :  { %s2678_s0 = inlined_call_operand.hbm [shape: f32[16,5,32,32], index: 0, kind: input, shape index: {}]   ;;  %s2679_s1 = inlined_call_operand.hbm [shape: f32[16,32,33], index: 1, kind: input, shape index: {}]   ;;  %s2680_s2 = inlined_call_operand.hbm [shape: f32[32,128], index: 2, kind: input, shape index: {}]   ;;  %s2681_s3 = inlined_call_operand.hbm [shape: f32[1,128], index: 3, kind: input, shape index: {}]   ;;  %s2682_s4 = inlined_call_operand.hbm [shape: f32[16,128], index: 4, kind: output, shape index: {}]  }
   0x1   :  { %2689 = sst [smem:[#allocation20_spill]] %s2680_s2 }
   0x2   :  { %2690 = sst [smem:[#allocation21_spill]] %s2681_s3 }
   0x3   :  { %9 = vsyncpa [#allocation4], 0 }
   0x4   :  { %11 = vsyncpa [#allocation4 + $0x1], 0 }
   0x5   :  { %12 = vsyncpa [#allocation7], 0 }
   0x6   :  { %14 = vsyncpa [#allocation7 + $0x1], 0 }
   0x7   :  { %15 = vsyncpa [#allocation10], 0 }
   0x8   :  { %16 = vsyncpa [#allocation5], 0 }
   0x9   :  { %18 = vsyncpa [#allocation5 + $0x1], 0  ;;  %s2103_s15 = smov 0   ;;  %s2105_s16 = smov 0  }
   0xa   :  { %s2107_s17 = smov 0   ;;  %s2109_s18 = smov 0  }
   0xb   :  { %s2111_s19 = smov 0   ;;  %s2113_s20 = smov 0  }
   0xc LB: > { %2691 = sst [smem:[#allocation17_spill]] %s2058_s17  ;;  %s2134_s21 = sadd.s32 4294967295, %s2070_s20   ;;  %s2070_s20 = sphi %s2113_s20, %s24_s20   ;;  %s2066_s19 = sphi %s2111_s19, %s2709_s19   ;;  %s2062_s18 = sphi %s2109_s18, %s2708_s18   ;;  %s2058_s17 = sphi %s2107_s17, %s2704_s17   ;;  %s2054_s16 = sphi %s2105_s16, %s2707_s16   ;;  %s2050_s15 = sphi %s2103_s15, %s2706_s15  }
   0xd   : > { %s1585_s22 = sadd.s32 4294967294, %s2070_s20   ;;  %p58_p0 = scmp.ne.s32.totalorder %s2054_s16, %s2050_s15 }
   0xe   : > { %p59_p1 = scmp.eq.s32.totalorder %s2134_s21, 0  ;;  %p152_p2 = scmp.eq.s32.totalorder %s2134_s21, 1 }
   0xf   : > { %p158_p3 = scmp.eq.s32.totalorder %s1585_s22, 1  ;;  %p1586_p5 = scmp.ge.s32.totalorder %s2070_s20, 1 }
  0x10   : > { %p2143_p4 = por %p59_p1, %p58_p0  ;;  %p165_p7 = scmp.lt.s32.totalorder %s2070_s20, 3 }
  0x11   : > { %p2148_p6 = por %p158_p3, %p58_p0  ;;  %s2694_s2 = sld [smem:[#allocation20_spill]] }
  0x12   : > { %p2156_p8 = pnand %p1586_p5, %p165_p7  ;;  %s2072_s29 = smov [#allocation8]  }
  0x13   : > { %s178_s30 = sshll.u32 %s2072_s29, 4  ;;  %p1589_p11 = scmp.ge.s32.totalorder %s2070_s20, 2  ;;  %s179_s30 = int_to_ptr.vmem [resolvable:$true] %s178_s30 }
  0x14   : > { %p1754_p9 = pneg %p2156_p8  ;;  %s2696_s3 = sld [smem:[#allocation21_spill]] }
  0x15   : > { %s2683_s8 = smov 128   ;;  %s2685_s9 = smov 8  }
  0x16   : > { %p1755_p10 = pnand %p1754_p9, %p59_p1  ;;  %s2075_s10 = smov [#allocation9]  }
  0x17   : > { %s176_s27 = sshll.u32 %s2694_s2, 4  ;;  %s193_s11 = sshll.u32 %s2075_s10, 4  ;;  %s177_s27 = int_to_ptr.hbm [resolvable:$true] %s176_s27  ;;  %s194_s11 = int_to_ptr.vmem [resolvable:$true] %s193_s11 }
  0x18   : > { %1757 = dma.hbm_to_vmem [thread:$0]  (!%p1755_p10), %s177_s27, 512, %s179_s30, [#allocation7], %s2683_s8, %s2683_s8, %s2685_s9  }
  0x19   : > { %s36_s12 = sadd.s32 1, %s2066_s19  ;;  %s45_s13 = sadd.s32 1, %s2058_s17 }
  0x1a   : > { %s191_s7 = sshll.u32 %s2696_s3, 4  ;;  %p38_p12 = scmp.ge.s32.totalorder %s36_s12, 2  ;;  %s192_s7 = int_to_ptr.hbm [resolvable:$true] %s191_s7 }
  0x1b   : > { %1760 = dma.hbm_to_vmem [thread:$0]  (!%p1755_p10), %s192_s7, 16, %s194_s11, [#allocation10]  }
  0x1c   : > { %p52_p13 = scmp.ne.s32.totalorder %s2058_s17, %s2054_s16  ;;  %p53_p0 = scmp.eq.s32.totalorder %s2070_s20, 0 }
  0x1d   : > { %p1774_p3 = scmp.lt.s32.totalorder %s2070_s20, 2  ;;  %s2711_s12 = smov (%p38_p12, %s36_s12), 0 }
  0x1e   : > { %2697 = sst [smem:[#allocation18_spill]] %s2711_s12  ;;  %p54_p5 = por %p53_p0, %p52_p13 }
  0x1f   : > { %p2181_p7 = por %p152_p2, %p52_p13  ;;  %s40_s22 = ssub.s32 %s2066_s19, %s2711_s12 }
  0x20   : > { %s204_s25 = sand.u32 1, %s2058_s17   ;;  %p43_p9 = scmp.eq.s32.totalorder %s40_s22, 0 }
  0x21   : > { %s1737_s26 = smul.u32 1280, %s204_s25  ;;  %p2188_p10 = pnand %p1774_p3, %p54_p5 }
  0x22   : > { %s2193_s29 = scalar_select %p43_p9, %s2058_s17, %s45_s13  }
  0x23   : > { %s1738_s30 = smul.u32 1280, %s2066_s19  ;;  %s208_s5 = scalar_lea.vmem [#allocation3], %s1737_s26 }
  0x24   : > { %2700 = sst [smem:[#allocation19_spill]] %s2193_s29  ;;  %s219_s6 = sshll.u32 %s208_s5, 4  ;;  %s220_s6 = int_to_ptr.vmem [resolvable:$true] %s219_s6 }
  0x25   : > { %s216_s11 = scalar_lea.hbm %s2678_s0, %s1738_s30  ;;  %s229_s9 = sand.u32 1, %s2070_s20  }
  0x26   : > { %s217_s8 = sshll.u32 %s216_s11, 4  ;;  %s205_s22 = scalar_lea.sflag [#allocation4], %s204_s25  ;;  %s218_s8 = int_to_ptr.hbm [resolvable:$true] %s217_s8 }
  0x27   : > { %s2701_s2 = smov 8   ;;  %s2702_s3 = smov 128  }
  0x28   : > { %1764 = dma.hbm_to_vmem [thread:$0]  (!%p2188_p10), %s218_s8, 20480, %s220_s6, %s205_s22, %s2702_s3, %s2702_s3, %s2701_s2  }
  0x29   : > { %s1593_s13 = sshll.u32 %s204_s25, 8  ;;  %s1736_s12 = sshll.u32 %s2066_s19, 8 }
  0x2a   : > { %s241_s5 = scalar_lea.hbm %s2679_s1, %s1736_s12  ;;  %s233_s7 = scalar_lea.vmem [#allocation6], %s1593_s13 }
  0x2b   : > { %s242_s17 = sshll.u32 %s241_s5, 4  ;;  %s244_s30 = sshll.u32 %s233_s7, 4  ;;  %s243_s17 = int_to_ptr.hbm [resolvable:$true] %s242_s17  ;;  %s245_s30 = int_to_ptr.vmem [resolvable:$true] %s244_s30 }
  0x2c   : > { %s230_s10 = scalar_lea.sflag [#allocation7], %s229_s9  ;;  %256 = sbr.rel (%p2156_p8) target bundleno = 689 (0x2b1), region = 36 }
  0x2d   : > { %1767 = dma.hbm_to_vmem [thread:$0]  (!%p2188_p10), %s243_s17, 4096, %s245_s30, %s230_s10, %s2702_s3, %s2702_s3, %s2701_s2  }
  0x2e   : > { %s2217_s8 = sand.u32 (!%p2156_p8), 1, %s2054_s16  }
  0x2f   : > { %s1739_s12 = smul.u32 (!%p2156_p8), 1280, %s2217_s8  ;;  %s259_s25 = scalar_lea.sflag (!%p2156_p8), [#allocation4], %s2217_s8 }
  0x31   : > { %s2221_s29 = scalar_lea.vmem [#allocation3], %s1739_s12 }
  0x32   : > { %2029 = dma.done.wait (%p2143_p4), %s259_s25, 20480  }
  0x33   : > { %2031 = vsyncadd (%p2143_p4), %s259_s25, 4294946816  ;;  %s268_s2 = sand.u32 1, %s2134_s21   ;;  %s1598_s3 = sshll.u32 %s2217_s8, 8 }
  0x34   : > { %s269_s17 = scalar_lea.sflag [#allocation7], %s268_s2  ;;  %s2229_s28 = scalar_lea.vmem [#allocation6], %s1598_s3 }
  0x35   : > { %2033 = dma.done.wait (%p2143_p4), %s269_s17, 4096  }
  0x36   : > { %2035 = vsyncadd (%p2143_p4), %s269_s17, 4294963200 }
  0x37   : > { %2037 = dma.done.wait (%p59_p1), [#allocation7], 512  }
  0x38   : > { %2039 = vsyncadd (%p59_p1), [#allocation7], 4294966784 }
  0x39   : > { %2041 = dma.done.wait (%p59_p1), [#allocation10], 16  }
  0x3a   : > { %2043 = vsyncadd (%p59_p1), [#allocation10], 4294967280  ;;  %v2076_v0 = vmov 32   ;;  %v2244_v1 = vld [vmem:[%s2229_s28 + $0x80] sm:$0xff]  ;;  %v2268_v7 = vld [vmem:[%s2229_s28 + $0x8] sm:$0xff]  ;;  %vm321_vm0 = vcmask 261120  }
  0x3b   : > { %1834 = vset.pattern.permute.xlu2 %v2076_v0  ;;  %1833 = vset.pattern.permute.xlu1 %v2076_v0  ;;  %v2247_v2 = vld [vmem:[%s2229_s28 + $0x40] sm:$0xff]  ;;  %v2280_v10 = vld [vmem:[%s2229_s28 + $0x68] sm:$0xff]  ;;  %v2298_v16 = vld [vmem:[%s2229_s28 + $0x30] sm:$0xff]  ;;  %v2077_v22 = vmov 0.0   ;;  %s1601_s21 = sshll.u32 %s2217_s8, 3  ;;  %s1732_s23 = sshll.u32 %s2062_s18, 3 }
  0x3c   : > { %1832 = vset.pattern.permute.xlu0 %v2076_v0  ;;  %v2250_v3 = vld [vmem:[%s2229_s28] sm:$0xff]  ;;  %524 = vperm.xlu2 %1834, %v2244_v1   ;;  %v2283_v11 = vld [vmem:[%s2229_s28 + $0x48] sm:$0xff]  ;;  %v967_v17 = vld [vmem:[%s2229_s28 + $0x10] sm:$0xff]  ;;  %326 = vst.msk [vmem:[#allocation2 + $0x20] sm:$0xff] %vm321_vm0, %v2077_v22  ;;  %s1453_s6 = scalar_lea.hbm %s2682_s4, %s1732_s23  ;;  %s312_s11 = scalar_lea.vmem [#allocation11], %s1601_s21 }
  0x3d   : > { %514 = vperm.xlu1 %1833, %v2247_v2   ;;  %504 = vperm.xlu0 %1832, %v2250_v3   ;;  %v2256_v4 = vld [vmem:[%s2229_s28 + $0xa0] sm:$0xff]  ;;  %v2286_v12 = vld [vmem:[%s2229_s28 + $0x28] sm:$0xff]  ;;  %v2304_v19 = vld [vmem:[%s2229_s28 + $0x90] sm:$0xff]  ;;  %322 = vst.msk [vmem:[#allocation2] sm:$0xff] %vm321_vm0, %v2077_v22  ;;  %s1455_s22 = sshll.u32 %s312_s11, 4  ;;  %s1457_s13 = sshll.u32 %s1453_s6, 4  ;;  %s1456_s22 = int_to_ptr.vmem [resolvable:$true] %s1455_s22  ;;  %s1458_s13 = int_to_ptr.hbm [resolvable:$true] %s1457_s13 }
  0x3e   : > { %v2259_v5 = vld [vmem:[%s2229_s28 + $0x60] sm:$0xff]  ;;  %v2292_v13 = vld [vmem:[%s2229_s28 + $0xc8] sm:$0xff]  ;;  %v970_v20 = vld [vmem:[%s2229_s28 + $0x70] sm:$0xff]  ;;  %323 = vst.msk [vmem:[#allocation2 + $0x8] sm:$0xff] %vm321_vm0, %v2077_v22  ;;  %s1443_s18 = scalar_lea.sflag [#allocation5], %s2217_s8  ;;  %s1990_s26 = sshra.s32 %s1458_s13, 4  ;;  %s1991_s26 = int_to_ptr.hbm [resolvable:$true] %s1990_s26 }
  0x3f   : > { %v2262_v6 = vld [vmem:[%s2229_s28 + $0x20] sm:$0xff]  ;;  %v732_v14 = vld [vmem:[%s2229_s28 + $0xa8] sm:$0xff]  ;;  %v969_v21 = vld [vmem:[%s2229_s28 + $0x50] sm:$0xff]  ;;  %324 = vst.msk [vmem:[#allocation2 + $0x10] sm:$0xff] %vm321_vm0, %v2077_v22  ;;  %s1992_s5 = scalar_lea.hbm %s1991_s26, 8  ;;  %s1996_s10 = scalar_lea.hbm %s2682_s4, 16 }
  0x40   : > { %v2271_v8 = vld [vmem:[%s2229_s28 + $0xe0] sm:$0xff]  ;;  %v731_v15 = vld [vmem:[%s2229_s28 + $0x88] sm:$0xff]  ;;  %v2313_v23 = vld [vmem:[%s2229_s28 + $0xf0] sm:$0xff]  ;;  %325 = vst.msk [vmem:[#allocation2 + $0x18] sm:$0xff] %vm321_vm0, %v2077_v22  ;;  %p1993_p1 = scmp.ne.s32.totalorder %s1991_s26, %s1992_s5  ;;  %p1997_p8 = scmp.lt.s32.totalorder %s1991_s26, %s2682_s4 }
  0x41   : > { %v2274_v9 = vld [vmem:[%s2229_s28 + $0xc0] sm:$0xff]  ;;  %v734_v18 = vld [vmem:[%s2229_s28 + $0xe8] sm:$0xff]  ;;  %v973_v24 = vld [vmem:[%s2229_s28 + $0xd0] sm:$0xff]  ;;  %327 = vst.msk [vmem:[#allocation2 + $0x28] sm:$0xff] %vm321_vm0, %v2077_v22  ;;  %p1998_p12 = scmp.lt.s32.totalorder %s1996_s10, %s1992_s5 }
  0x42   : > { %v972_v25 = vld [vmem:[%s2229_s28 + $0xb0] sm:$0xff]  ;;  %328 = vst.msk [vmem:[#allocation2 + $0x30] sm:$0xff] %vm321_vm0, %v2077_v22  ;;  %v334_v26 = vld [vmem:[%s2221_s29 + $0x280] sm:$0xff]  ;;  %v1209_v29 = vld [vmem:[%s2229_s28 + $0x58] sm:$0xff]  ;;  %p1994_p2 = pnand %p1993_p1, %p2181_p7 }
  0x43   : > { %329 = vst.msk [vmem:[#allocation2 + $0x38] sm:$0xff] %vm321_vm0, %v2077_v22  ;;  %v1606_v27 = vld [vmem:[%s2221_s29 + $0x2a0] sm:$0xff]  ;;  %vm342_vm1 = vcmp.eq.f32.partialorder %v334_v26, 0.0  ;;  %v1208_v30 = vld [vmem:[%s2229_s28 + $0x38] sm:$0xff]  ;;  %v575_v58 = vld [vmem:[%s2221_s29 + $0x8] sm:$0xff]  ;;  %p1999_p13 = por %p1998_p12, %p1997_p8 }
  0x44   : > { %529 = vperm.xlu2 %1834, %v2256_v4   ;;  %vm367_vm2 = vcmp.eq.f32.partialorder %v1606_v27, 0.0  ;;  %v1614_v28 = vld [vmem:[%s2221_s29 + $0x2c0] sm:$0xff]  ;;  %v1207_v31 = vld [vmem:[%s2229_s28 + $0x18] sm:$0xff]  ;;  %v350_v32 = vsel %vm342_vm1, -1e+18, %v334_v26  ;;  %v1634_v59 = vld [vmem:[%s2221_s29 + $0x28] sm:$0xff]  ;;  %p1995_p4 = pneg %p1994_p2 }
  0x45   : > { %519 = vperm.xlu1 %1833, %v2259_v5   ;;  %509 = vperm.xlu0 %1832, %v2262_v6   ;;  %v375_v33 = vsel %vm367_vm2, -1e+18, %v1606_v27  ;;  %vm400_vm3 = vcmp.eq.f32.partialorder %v1614_v28, 0.0  ;;  %v1622_v34 = vld [vmem:[%s2221_s29 + $0x2e0] sm:$0xff]  ;;  %v1212_v46 = vld [vmem:[%s2229_s28 + $0xb8] sm:$0xff]  ;;  %v1642_v60 = vld [vmem:[%s2221_s29 + $0x48] sm:$0xff] }
  0x46   : > { %v383_v35 = vmax.f32 %v350_v32, %v375_v33  ;;  %v1630_v36 = vld [vmem:[%s2221_s29 + $0x300] sm:$0xff]  ;;  %v408_v37 = vsel %vm400_vm3, -1e+18, %v1614_v28  ;;  %vm433_vm4 = vcmp.eq.f32.partialorder %v1622_v34, 0.0  ;;  %v1211_v47 = vld [vmem:[%s2229_s28 + $0x98] sm:$0xff]  ;;  %vm583_vm11 = vcmp.eq.f32.partialorder %v575_v58, 0.0  ;;  %p2000_p0 = pnand %p1999_p13, %p1995_p4 }
  0x47   : > { %v335_v38 = vld [vmem:[%s2221_s29 + $0x320] sm:$0xff]  ;;  %vm466_vm8 = vcmp.eq.f32.partialorder %v1630_v36, 0.0  ;;  %v1210_v50 = vld [vmem:[%s2229_s28 + $0x78] sm:$0xff]  ;;  %v441_v51 = vsel %vm433_vm4, -1e+18, %v1622_v34  ;;  %vm607_vm12 = vcmp.eq.f32.partialorder %v1634_v59, 0.0 }
  0x48   : > { %v1607_v39 = vld [vmem:[%s2221_s29 + $0x340] sm:$0xff]  ;;  %vm343_vm5 = vcmp.eq.f32.partialorder %v335_v38, 0.0  ;;  %v416_v48 = vmax.f32 %v383_v35, %v408_v37  ;;  %v474_v54 = vsel %vm466_vm8, -1e+18, %v1630_v36  ;;  %vm639_vm13 = vcmp.eq.f32.partialorder %v1642_v60, 0.0  ;;  %v1650_v61 = vld [vmem:[%s2221_s29 + $0x68] sm:$0xff] }
  0x49   : > { %v1615_v40 = vld [vmem:[%s2221_s29 + $0x360] sm:$0xff]  ;;  %vm368_vm6 = vcmp.eq.f32.partialorder %v1607_v39, 0.0  ;;  %v351_v43 = vsel %vm343_vm5, -1e+18, %v335_v38  ;;  %v1658_v62 = vld [vmem:[%s2221_s29 + $0x88] sm:$0xff]  ;;  %v1214_v0 = vld [vmem:[%s2229_s28 + $0xf8] sm:$0xff] }
  0x4a   : > { %vm401_vm7 = vcmp.eq.f32.partialorder %v1615_v40, 0.0  ;;  %v1623_v41 = vld [vmem:[%s2221_s29 + $0x380] sm:$0xff]  ;;  %v376_v44 = vsel %vm368_vm6, -1e+18, %v1607_v39  ;;  %v449_v55 = vmax.f32 %v416_v48, %v441_v51  ;;  %vm671_vm14 = vcmp.eq.f32.partialorder %v1650_v61, 0.0  ;;  %v578_v28 = vld [vmem:[%s2221_s29 + $0x1e8] sm:$0xff] }
  0x4b   : > { %v1631_v42 = vld [vmem:[%s2221_s29 + $0x3a0] sm:$0xff]  ;;  %v409_v45 = vsel %vm401_vm7, -1e+18, %v1615_v40  ;;  %v384_v49 = vmax.f32 %v351_v43, %v376_v44  ;;  %vm434_vm9 = vcmp.eq.f32.partialorder %v1623_v41, 0.0  ;;  %vm703_vm15 = vcmp.eq.f32.partialorder %v1658_v62, 0.0  ;;  %v1653_v32 = vld [vmem:[%s2221_s29 + $0x248] sm:$0xff] }
  0x4c   : > { %745 = vperm.xlu2 %1834, %v2268_v7   ;;  %v442_v52 = vsel %vm434_vm9, -1e+18, %v1623_v41  ;;  %vm467_vm10 = vcmp.eq.f32.partialorder %v1631_v42, 0.0  ;;  %v332_v63 = vld [vmem:[%s2221_s29 + $0x140] sm:$0xff]  ;;  %v679_v26 = vsel %vm671_vm14, -1e+18, %v1650_v61 }
  0x4d   : > { %539 = vperm.xlu1 %1833, %v2271_v8   ;;  %534 = vperm.xlu0 %1832, %v2274_v9   ;;  %v417_v53 = vmax.f32 %v384_v49, %v409_v45  ;;  %v475_v57 = vsel %vm467_vm10, -1e+18, %v1631_v42  ;;  %vm340_vm1 = vcmp.eq.f32.partialorder %v332_v63, 0.0  ;;  %v1612_v22 = vld [vmem:[%s2221_s29 + $0x180] sm:$0xff]  ;;  %v711_v27 = vsel %vm703_vm15, -1e+18, %v1658_v62 }
  0x4e   : > { %vm586_vm2 = vcmp.eq.f32.partialorder %v578_v28, 0.0  ;;  %v1661_v33 = vld [vmem:[%s2221_s29 + $0x268] sm:$0xff]  ;;  %v330_v34 = vld [vmem:[%s2221_s29] sm:$0xff]  ;;  %vm674_vm6 = vcmp.eq.f32.partialorder %v1653_v32, 0.0  ;;  %v348_v43 = vsel %vm340_vm1, -1e+18, %v332_v63 }
  0x4f   : > { %v450_v56 = vmax.f32 %v417_v53, %v442_v52  ;;  %v594_v35 = vsel %vm586_vm2, -1e+18, %v578_v28  ;;  %v682_v40 = vsel %vm674_vm6, -1e+18, %v1653_v32  ;;  %v1620_v41 = vld [vmem:[%s2221_s29 + $0x1a0] sm:$0xff]  ;;  %vm706_vm7 = vcmp.eq.f32.partialorder %v1661_v33, 0.0 }
  0x50   : > { %v1628_v42 = vld [vmem:[%s2221_s29 + $0x1c0] sm:$0xff]  ;;  %vm398_vm8 = vcmp.eq.f32.partialorder %v1612_v22, 0.0  ;;  %vm431_vm9 = vcmp.eq.f32.partialorder %v1620_v41, 0.0 }
  0x51   : > { %v1602_v49 = vld [vmem:[%s2221_s29 + $0x20] sm:$0xff]  ;;  %v406_v52 = vsel %vm398_vm8, -1e+18, %v1612_v22  ;;  %vm464_vm10 = vcmp.eq.f32.partialorder %v1628_v42, 0.0 }
  0x52   : > { %v1618_v51 = vld [vmem:[%s2221_s29 + $0x60] sm:$0xff] }
  0x53   : > { %vm429_vm14 = vcmp.eq.f32.partialorder %v1618_v51, 0.0 }
  0x54   : > { %760 = vperm.xlu2 %1834, %v2280_v10  }
  0x55   : > { %755 = vperm.xlu1 %1833, %v2283_v11   ;;  %750 = vperm.xlu0 %1832, %v2286_v12  }
  0x5c   : > { %775 = vperm.xlu2 %1834, %v2292_v13  }
  0x5d   : > { %770 = vperm.xlu1 %1833, %v732_v14   ;;  %765 = vperm.xlu0 %1832, %v731_v15   ;;  %v591_v14 = vsel %vm583_vm11, -1e+18, %v575_v58  ;;  %v615_v15 = vsel %vm607_vm12, -1e+18, %v1634_v59  ;;  %vm338_vm11 = vcmp.eq.f32.partialorder %v330_v34, 0.0  ;;  %v581_v58 = vld [vmem:[%s2221_s29 + $0x3c8] sm:$0xff] }
  0x5e   : > { %v346_v59 = vsel %vm338_vm11, -1e+18, %v330_v34  ;;  %vm363_vm12 = vcmp.eq.f32.partialorder %v1602_v49, 0.0  ;;  %vm589_vm1 = vcmp.eq.f32.partialorder %v581_v58, 0.0 }
  0x5f   : > { %v371_v63 = vsel %vm363_vm12, -1e+18, %v1602_v49  ;;  %v1603_v49 = vld [vmem:[%s2221_s29 + $0xc0] sm:$0xff] }
  0x60   : > { %vm364_vm12 = vcmp.eq.f32.partialorder %v1603_v49, 0.0 }
  0x64   : > { %990 = vperm.xlu2 %1834, %v2298_v16  }
  0x65   : > { %985 = vperm.xlu1 %1833, %v967_v17   ;;  %780 = vperm.xlu0 %1832, %v734_v18   ;;  %v647_v17 = vsel %vm639_vm13, -1e+18, %v1642_v60  ;;  %v1213_v18 = vld [vmem:[%s2229_s28 + $0xd8] sm:$0xff]  ;;  %v1640_v60 = vld [vmem:[%s2221_s29 + $0x3e8] sm:$0xff] }
  0x66   : > { %vm613_vm2 = vcmp.eq.f32.partialorder %v1640_v60, 0.0 }
  0x6c   : > { %1005 = vperm.xlu2 %1834, %v2304_v19  }
  0x6d   : > { %1000 = vperm.xlu1 %1833, %v970_v20   ;;  %995 = vperm.xlu0 %1832, %v969_v21   ;;  %v623_v20 = vmax.f32 %v591_v14, %v615_v15  ;;  %v1604_v21 = vld [vmem:[%s2221_s29 + $0x160] sm:$0xff]  ;;  %v1648_v14 = vld [vmem:[%s2221_s29 + $0x408] sm:$0xff] }
  0x6e   : > { %vm365_vm4 = vcmp.eq.f32.partialorder %v1604_v21, 0.0  ;;  %v1656_v15 = vld [vmem:[%s2221_s29 + $0x428] sm:$0xff] }
  0x6f   : > { %v373_v44 = vsel %vm365_vm4, -1e+18, %v1604_v21  ;;  %vm677_vm4 = vcmp.eq.f32.partialorder %v1656_v15, 0.0 }
  0x70   : > { %v381_v48 = vmax.f32 %v348_v43, %v373_v44  ;;  %v331_v44 = vld [vmem:[%s2221_s29 + $0xa0] sm:$0xff] }
  0x71   : > { %vm339_vm11 = vcmp.eq.f32.partialorder %v331_v44, 0.0 }
  0x74   : > { %1020 = vperm.xlu2 %1834, %v2313_v23  }
  0x75   : > { %1015 = vperm.xlu1 %1833, %v973_v24   ;;  %1010 = vperm.xlu0 %1832, %v972_v25   ;;  %v2350_v24 = vmax.f32 %v449_v55, %v474_v54  ;;  %v2352_v25 = vmax.f32 %v450_v56, %v475_v57  ;;  %v414_v54 = vmax.f32 %v381_v48, %v406_v52  ;;  %v439_v55 = vsel %vm431_vm9, -1e+18, %v1620_v41  ;;  %v1626_v57 = vld [vmem:[%s2221_s29 + $0x80] sm:$0xff] }
  0x76   : > { %v472_v56 = vsel %vm464_vm10, -1e+18, %v1628_v42  ;;  %vm462_vm15 = vcmp.eq.f32.partialorder %v1626_v57, 0.0  ;;  %v498_v41 = vld [vmem:[#allocation2 + $0x20] sm:$0xff] }
  0x77   : > { %v447_v62 = vmax.f32 %v414_v54, %v439_v55  ;;  %v470_v22 = vsel %vm462_vm15, -1e+18, %v1626_v57  ;;  %v1611_v52 = vld [vmem:[%s2221_s29 + $0xe0] sm:$0xff] }
  0x78   : > { %v1627_v54 = vld [vmem:[%s2221_s29 + $0x120] sm:$0xff] }
  0x79   : > { %v2377_v21 = vmax.f32 %v447_v62, %v472_v56  ;;  %v1667_v62 = vld [vmem:[%s2221_s29 + $0xd0] sm:$0xff]  ;;  %vm463_vm15 = vcmp.eq.f32.partialorder %v1627_v54, 0.0 }
  0x7c   : > { %1235 = vperm.xlu2 %1834, %v1209_v29   ;;  %v1637_v29 = vld [vmem:[%s2221_s29 + $0x208] sm:$0xff] }
  0x7d   : > { %1230 = vperm.xlu1 %1833, %v1208_v30   ;;  %1225 = vperm.xlu0 %1832, %v1207_v31   ;;  %v655_v30 = vmax.f32 %v623_v20, %v647_v17  ;;  %vm610_vm3 = vcmp.eq.f32.partialorder %v1637_v29, 0.0  ;;  %v1645_v31 = vld [vmem:[%s2221_s29 + $0x228] sm:$0xff]  ;;  %v379_v17 = vmax.f32 %v346_v59, %v371_v63  ;;  %v347_v59 = vsel %vm339_vm11, -1e+18, %v331_v44 }
  0x7e   : > { %v618_v36 = vsel %vm610_vm3, -1e+18, %v1637_v29  ;;  %vm642_vm5 = vcmp.eq.f32.partialorder %v1645_v31, 0.0  ;;  %v1664_v20 = vld [vmem:[%s2221_s29 + $0x448] sm:$0xff]  ;;  %v621_v29 = vsel %vm613_vm2, -1e+18, %v1640_v60 }
  0x7f   : > { %v687_v37 = vmax.f32 %v655_v30, %v679_v26  ;;  %v626_v38 = vmax.f32 %v594_v35, %v618_v36  ;;  %v650_v39 = vsel %vm642_vm5, -1e+18, %v1645_v31  ;;  %v597_v26 = vsel %vm589_vm1, -1e+18, %v581_v58  ;;  %v1605_v30 = vld [vmem:[%s2221_s29 + $0x200] sm:$0xff]  ;;  %v816_v60 = vld [vmem:[%s2221_s29 + $0xb0] sm:$0xff] }
  0x80   : > { %vm645_vm3 = vcmp.eq.f32.partialorder %v1648_v14, 0.0  ;;  %v1613_v31 = vld [vmem:[%s2221_s29 + $0x220] sm:$0xff]  ;;  %v685_v35 = vsel %vm677_vm4, -1e+18, %v1656_v15  ;;  %vm709_vm5 = vcmp.eq.f32.partialorder %v1664_v20, 0.0  ;;  %vm824_vm1 = vcmp.eq.f32.partialorder %v816_v60, 0.0 }
  0x81   : > { %v2364_v45 = vmax.f32 %v687_v37, %v711_v27  ;;  %v333_v27 = vld [vmem:[%s2221_s29 + $0x1e0] sm:$0xff]  ;;  %v653_v34 = vsel %vm645_vm3, -1e+18, %v1648_v14  ;;  %vm399_vm8 = vcmp.eq.f32.partialorder %v1613_v31, 0.0  ;;  %v372_v63 = vsel %vm364_vm12, -1e+18, %v1603_v49 }
  0x82   : > { %vm341_vm6 = vcmp.eq.f32.partialorder %v333_v27, 0.0  ;;  %v407_v48 = vsel %vm399_vm8, -1e+18, %v1613_v31  ;;  %v380_v15 = vmax.f32 %v347_v59, %v372_v63  ;;  %vm848_vm2 = vcmp.eq.f32.partialorder %v1667_v62, 0.0  ;;  %v1632_v63 = vld [vmem:[%s2221_s29 + $0x440] sm:$0xff] }
  0x83   : > { %v349_v43 = vsel %vm341_vm6, -1e+18, %v333_v27  ;;  %v471_v27 = vsel %vm463_vm15, -1e+18, %v1627_v54  ;;  %vm468_vm15 = vcmp.eq.f32.partialorder %v1632_v63, 0.0 }
  0x84   : > { %1250 = vperm.xlu2 %1834, %v1212_v46   ;;  %v658_v46 = vmax.f32 %v626_v38, %v650_v39  ;;  %v717_v38 = vsel %vm709_vm5, -1e+18, %v1664_v20  ;;  %v1621_v39 = vld [vmem:[%s2221_s29 + $0x240] sm:$0xff]  ;;  %v1675_v20 = vld [vmem:[%s2221_s29 + $0xf0] sm:$0xff] }
  0x85   : > { %1245 = vperm.xlu1 %1833, %v1211_v47   ;;  %1240 = vperm.xlu0 %1832, %v1210_v50   ;;  %v714_v47 = vsel %vm706_vm7, -1e+18, %v1661_v33  ;;  %v1610_v50 = vld [vmem:[%s2221_s29 + $0x40] sm:$0xff]  ;;  %v629_v33 = vmax.f32 %v597_v26, %v621_v29  ;;  %vm366_vm7 = vcmp.eq.f32.partialorder %v1605_v30, 0.0  ;;  %vm432_vm9 = vcmp.eq.f32.partialorder %v1621_v39, 0.0  ;;  %v499_v29 = vld [vmem:[#allocation2 + $0x28] sm:$0xff] }
  0x86   : > { %v690_v53 = vmax.f32 %v658_v46, %v682_v40  ;;  %vm396_vm13 = vcmp.eq.f32.partialorder %v1610_v50, 0.0  ;;  %v1629_v40 = vld [vmem:[%s2221_s29 + $0x260] sm:$0xff]  ;;  %v440_v56 = vsel %vm432_vm9, -1e+18, %v1621_v39  ;;  %vm880_vm3 = vcmp.eq.f32.partialorder %v1675_v20, 0.0 }
  0x87   : > { %v661_v42 = vmax.f32 %v629_v33, %v653_v34  ;;  %vm465_vm10 = vcmp.eq.f32.partialorder %v1629_v40, 0.0  ;;  %v856_v33 = vsel %vm848_vm2, -1e+18, %v1667_v62  ;;  %v337_v34 = vld [vmem:[%s2221_s29 + $0x460] sm:$0xff]  ;;  %v888_v39 = vsel %vm880_vm3, -1e+18, %v1675_v20 }
  0x88   : > { %v2372_v61 = vmax.f32 %v690_v53, %v714_v47  ;;  %v1619_v53 = vld [vmem:[%s2221_s29 + $0x100] sm:$0xff]  ;;  %v473_v57 = vsel %vm465_vm10, -1e+18, %v1629_v40  ;;  %vm345_vm6 = vcmp.eq.f32.partialorder %v337_v34, 0.0 }
  0x89   : > { %v353_v49 = vsel %vm345_vm6, -1e+18, %v337_v34 }
  0x8d   : > { %1260 = vperm.xlu1 %1833, %v1214_v0   ;;  %1255 = vperm.xlu0 %1832, %v1213_v18   ;;  %v404_v0 = vsel %vm396_vm13, -1e+18, %v1610_v50  ;;  %v437_v18 = vsel %vm429_vm14, -1e+18, %v1618_v51  ;;  %v693_v50 = vmax.f32 %v661_v42, %v685_v35  ;;  %vm397_vm13 = vcmp.eq.f32.partialorder %v1611_v52, 0.0 }
  0x8e   : > { %v412_v28 = vmax.f32 %v379_v17, %v404_v0  ;;  %vm430_vm14 = vcmp.eq.f32.partialorder %v1619_v53, 0.0  ;;  %v405_v17 = vsel %vm397_vm13, -1e+18, %v1611_v52 }
  0x8f   : > { %v2393_v58 = vmax.f32 %v693_v50, %v717_v38  ;;  %v413_v31 = vmax.f32 %v380_v15, %v405_v17  ;;  %v1616_v50 = vld [vmem:[%s2221_s29 + $0x400] sm:$0xff]  ;;  %v1670_v15 = vld [vmem:[%s2221_s29 + $0x2b0] sm:$0xff] }
  0x90   : > { %v445_v37 = vmax.f32 %v412_v28, %v437_v18  ;;  %v438_v18 = vsel %vm430_vm14, -1e+18, %v1619_v53  ;;  %v1691_v28 = vld [vmem:[%s2221_s29 + $0x130] sm:$0xff]  ;;  %vm402_vm13 = vcmp.eq.f32.partialorder %v1616_v50, 0.0  ;;  %vm851_vm2 = vcmp.eq.f32.partialorder %v1670_v15, 0.0 }
  0x91   : > { %v446_v38 = vmax.f32 %v413_v31, %v438_v18  ;;  %vm944_vm5 = vcmp.eq.f32.partialorder %v1691_v28, 0.0  ;;  %v1678_v17 = vld [vmem:[%s2221_s29 + $0x2d0] sm:$0xff]  ;;  %v577_v31 = vld [vmem:[%s2221_s29 + $0x148] sm:$0xff] }
  0x92   : > { %v2387_v47 = vmax.f32 %v445_v37, %v470_v22  ;;  %v1683_v22 = vld [vmem:[%s2221_s29 + $0x110] sm:$0xff]  ;;  %v1617_v37 = vld [vmem:[%s2221_s29 + $0x4a0] sm:$0xff]  ;;  %v952_v44 = vsel %vm944_vm5, -1e+18, %v1691_v28  ;;  %vm883_vm3 = vcmp.eq.f32.partialorder %v1678_v17, 0.0  ;;  %vm585_vm6 = vcmp.eq.f32.partialorder %v577_v31, 0.0 }
  0x93   : > { %vm912_vm4 = vcmp.eq.f32.partialorder %v1683_v22, 0.0  ;;  %vm403_vm8 = vcmp.eq.f32.partialorder %v1617_v37, 0.0  ;;  %v1686_v28 = vld [vmem:[%s2221_s29 + $0x2f0] sm:$0xff] }
  0x94   : > { %v920_v40 = vsel %vm912_vm4, -1e+18, %v1683_v22  ;;  %v411_v54 = vsel %vm403_vm8, -1e+18, %v1617_v37  ;;  %vm915_vm4 = vcmp.eq.f32.partialorder %v1686_v28, 0.0 }
  0x96   : > { %v525_v32 = vpop.permute.xlu2 %524 }
  0x97   : > { %v546_v36 = vmul.f32 %v525_v32, %v2350_v24  ;;  %v374_v24 = vsel %vm366_vm7, -1e+18, %v1605_v30  ;;  %v832_v32 = vsel %vm824_vm1, -1e+18, %v816_v60 }
  0x98   : > { %v382_v51 = vmax.f32 %v349_v43, %v374_v24  ;;  %v1608_v24 = vld [vmem:[%s2221_s29 + $0x3e0] sm:$0xff] }
  0x99   : > { %v554_v46 = vadd.f32 %v546_v36, %v2244_v1  ;;  %v864_v36 = vmax.f32 %v832_v32, %v856_v33  ;;  %vm369_vm12 = vcmp.eq.f32.partialorder %v1608_v24, 0.0  ;;  %v476_v32 = vsel %vm468_vm15, -1e+18, %v1632_v63 }
  0x9a   : > { %v415_v1 = vmax.f32 %v382_v51, %v407_v48  ;;  %v2412_v48 = vmax.f32 %v446_v38, %v471_v27  ;;  %v1624_v51 = vld [vmem:[%s2221_s29 + $0x420] sm:$0xff]  ;;  %v377_v20 = vsel %vm369_vm12, -1e+18, %v1608_v24  ;;  %v1644_v38 = vld [vmem:[%s2221_s29 + $0x188] sm:$0xff] }
  0x9b   : > { %v562_v55 = vadd.f32 %v554_v46, %v498_v41  ;;  %v1625_v41 = vld [vmem:[%s2221_s29 + $0x4c0] sm:$0xff]  ;;  %v896_v43 = vmax.f32 %v864_v36, %v888_v39  ;;  %vm435_vm14 = vcmp.eq.f32.partialorder %v1624_v51, 0.0  ;;  %v891_v36 = vsel %vm883_vm3, -1e+18, %v1678_v17 }
  0x9c   : > { %v448_v14 = vmax.f32 %v415_v1, %v440_v56  ;;  %v1633_v46 = vld [vmem:[%s2221_s29 + $0x4e0] sm:$0xff]  ;;  %vm436_vm9 = vcmp.eq.f32.partialorder %v1625_v41, 0.0  ;;  %v443_v22 = vsel %vm435_vm14, -1e+18, %v1624_v51  ;;  %v1660_v51 = vld [vmem:[%s2221_s29 + $0x1c8] sm:$0xff]  ;;  %vm641_vm8 = vcmp.eq.f32.partialorder %v1644_v38, 0.0 }
  0x9d   : > { %571 = vst.msk [vmem:[#allocation2 + $0x20] sm:$0xff] %vm321_vm0, %v562_v55  ;;  %v928_v52 = vmax.f32 %v896_v43, %v920_v40  ;;  %vm469_vm10 = vcmp.eq.f32.partialorder %v1633_v46, 0.0 }
  0x9e   : > { %v530_v0 = vpop.permute.xlu2 %529  ;;  %v2402_v30 = vmax.f32 %v448_v14, %v473_v57  ;;  %v444_v57 = vsel %vm436_vm9, -1e+18, %v1625_v41  ;;  %v477_v60 = vsel %vm469_vm10, -1e+18, %v1633_v46  ;;  %vm705_vm10 = vcmp.eq.f32.partialorder %v1660_v51, 0.0 }
  0x9f   : > { %v547_v26 = vmul.f32 %v530_v0, %v2352_v25  ;;  %v1609_v25 = vld [vmem:[%s2221_s29 + $0x480] sm:$0xff]  ;;  %v2418_v59 = vmax.f32 %v928_v52, %v952_v44  ;;  %v819_v0 = vld [vmem:[%s2221_s29 + $0x290] sm:$0xff]  ;;  %v593_v44 = vsel %vm585_vm6, -1e+18, %v577_v31 }
  0xa0   : > { %vm370_vm7 = vcmp.eq.f32.partialorder %v1609_v25, 0.0  ;;  %vm827_vm1 = vcmp.eq.f32.partialorder %v819_v0, 0.0  ;;  %v496_v52 = vld [vmem:[#allocation2 + $0x10] sm:$0xff] }
  0xa1   : > { %v555_v35 = vadd.f32 %v547_v26, %v2256_v4  ;;  %v336_v4 = vld [vmem:[%s2221_s29 + $0x3c0] sm:$0xff]  ;;  %v378_v53 = vsel %vm370_vm7, -1e+18, %v1609_v25  ;;  %v835_v33 = vsel %vm827_vm1, -1e+18, %v819_v0  ;;  %v1636_v25 = vld [vmem:[%s2221_s29 + $0x168] sm:$0xff] }
  0xa2   : > { %v386_v56 = vmax.f32 %v353_v49, %v378_v53  ;;  %vm344_vm11 = vcmp.eq.f32.partialorder %v336_v4, 0.0  ;;  %vm609_vm7 = vcmp.eq.f32.partialorder %v1636_v25, 0.0  ;;  %v1643_v0 = vld [vmem:[%s2221_s29 + $0xe8] sm:$0xff] }
  0xa3   : > { %v563_v42 = vadd.f32 %v555_v35, %v499_v29  ;;  %v352_v62 = vsel %vm344_vm11, -1e+18, %v336_v4  ;;  %v1694_v29 = vld [vmem:[%s2221_s29 + $0x310] sm:$0xff]  ;;  %v859_v35 = vsel %vm851_vm2, -1e+18, %v1670_v15 }
  0xa4   : > { %v419_v14 = vmax.f32 %v386_v56, %v411_v54  ;;  %v385_v27 = vmax.f32 %v352_v62, %v377_v20  ;;  %v867_v37 = vmax.f32 %v835_v33, %v859_v35  ;;  %vm947_vm5 = vcmp.eq.f32.partialorder %v1694_v29, 0.0  ;;  %v1635_v62 = vld [vmem:[%s2221_s29 + $0xc8] sm:$0xff] }
  0xa5   : > { %572 = vst.msk [vmem:[#allocation2 + $0x28] sm:$0xff] %vm321_vm0, %v563_v42  ;;  %v923_v42 = vsel %vm915_vm4, -1e+18, %v1686_v28  ;;  %v955_v43 = vsel %vm947_vm5, -1e+18, %v1694_v29  ;;  %v1651_v20 = vld [vmem:[%s2221_s29 + $0x108] sm:$0xff] }
  0xa6   : > { %v746_v55 = vpop.permute.xlu2 %745  ;;  %v452_v26 = vmax.f32 %v419_v14, %v444_v57  ;;  %v899_v49 = vmax.f32 %v867_v37, %v891_v36  ;;  %vm608_vm12 = vcmp.eq.f32.partialorder %v1635_v62, 0.0  ;;  %vm672_vm14 = vcmp.eq.f32.partialorder %v1651_v20, 0.0 }
  0xa7   : > { %v783_v1 = vmul.f32 %v746_v55, %v2364_v45  ;;  %v410_v45 = vsel %vm402_vm13, -1e+18, %v1616_v50  ;;  %v1652_v50 = vld [vmem:[%s2221_s29 + $0x1a8] sm:$0xff]  ;;  %v617_v55 = vsel %vm609_vm7, -1e+18, %v1636_v25  ;;  %vm640_vm13 = vcmp.eq.f32.partialorder %v1643_v0, 0.0 }
  0xa8   : > { %v2430_v34 = vmax.f32 %v452_v26, %v477_v60  ;;  %v931_v57 = vmax.f32 %v899_v49, %v923_v42  ;;  %v576_v60 = vld [vmem:[%s2221_s29 + $0xa8] sm:$0xff]  ;;  %vm673_vm9 = vcmp.eq.f32.partialorder %v1652_v50, 0.0  ;;  %v822_v26 = vld [vmem:[%s2221_s29 + $0x470] sm:$0xff]  ;;  %v616_v28 = vsel %vm608_vm12, -1e+18, %v1635_v62 }
  0xa9   : > { %v2425_v18 = vadd.f32 %v783_v1, %v2268_v7  ;;  %v418_v7 = vmax.f32 %v385_v27, %v410_v45  ;;  %v625_v1 = vmax.f32 %v593_v44, %v617_v55  ;;  %v681_v17 = vsel %vm673_vm9, -1e+18, %v1652_v50  ;;  %v1689_v44 = vld [vmem:[%s2221_s29 + $0x4d0] sm:$0xff] }
  0xaa   : > { %v2449_v15 = vmax.f32 %v931_v57, %v955_v43  ;;  %vm584_vm11 = vcmp.eq.f32.partialorder %v576_v60, 0.0  ;;  %v648_v33 = vsel %vm640_vm13, -1e+18, %v1643_v0  ;;  %vm830_vm1 = vcmp.eq.f32.partialorder %v822_v26, 0.0 }
  0xab   : > { %v451_v41 = vmax.f32 %v418_v7, %v443_v22  ;;  %v713_v22 = vsel %vm705_vm10, -1e+18, %v1660_v51  ;;  %v592_v27 = vsel %vm584_vm11, -1e+18, %v576_v60  ;;  %v1673_v7 = vld [vmem:[%s2221_s29 + $0x490] sm:$0xff]  ;;  %v580_v51 = vld [vmem:[%s2221_s29 + $0x328] sm:$0xff] }
  0xac   : > { %vm854_vm2 = vcmp.eq.f32.partialorder %v1673_v7, 0.0  ;;  %vm918_vm4 = vcmp.eq.f32.partialorder %v1689_v44, 0.0  ;;  %v1663_v60 = vld [vmem:[%s2221_s29 + $0x3a8] sm:$0xff]  ;;  %vm588_vm6 = vcmp.eq.f32.partialorder %v580_v51, 0.0 }
  0xad   : > { %v2439_v54 = vmax.f32 %v451_v41, %v476_v32  ;;  %v624_v32 = vmax.f32 %v592_v27, %v616_v28  ;;  %v862_v50 = vsel %vm854_vm2, -1e+18, %v1673_v7  ;;  %v926_v57 = vsel %vm918_vm4, -1e+18, %v1689_v44  ;;  %v579_v27 = vld [vmem:[%s2221_s29 + $0x288] sm:$0xff] }
  0xae   : > { %v761_v39 = vpop.permute.xlu2 %760  ;;  %vm708_vm10 = vcmp.eq.f32.partialorder %v1663_v60, 0.0  ;;  %v1654_v7 = vld [vmem:[%s2221_s29 + $0x2e8] sm:$0xff]  ;;  %vm587_vm11 = vcmp.eq.f32.partialorder %v579_v27, 0.0 }
  0xaf   : > { %v515_v40 = vpop.permute.xlu1 %514  ;;  %v786_v46 = vmul.f32 %v761_v39, %v2372_v61  ;;  %v505_v24 = vpop.permute.xlu0 %504  ;;  %v1681_v39 = vld [vmem:[%s2221_s29 + $0x4b0] sm:$0xff]  ;;  %v656_v42 = vmax.f32 %v624_v32, %v648_v33 }
  0xb0   : > { %v544_v4 = vmul.f32 %v515_v40, %v2377_v21  ;;  %v542_v53 = vmul.f32 %v505_v24, %v2387_v47  ;;  %v494_v21 = vld [vmem:[#allocation2] sm:$0xff]  ;;  %v649_v47 = vsel %vm641_vm8, -1e+18, %v1644_v38  ;;  %v680_v38 = vsel %vm672_vm14, -1e+18, %v1651_v20  ;;  %v497_v40 = vld [vmem:[#allocation2 + $0x18] sm:$0xff] }
  0xb1   : > { %v2442_v56 = vadd.f32 %v786_v46, %v2280_v10  ;;  %v657_v10 = vmax.f32 %v625_v1, %v649_v47  ;;  %v1697_v24 = vld [vmem:[%s2221_s29 + $0x4f0] sm:$0xff]  ;;  %vm886_vm3 = vcmp.eq.f32.partialorder %v1681_v39, 0.0  ;;  %v1655_v1 = vld [vmem:[%s2221_s29 + $0x388] sm:$0xff]  ;;  %vm675_vm14 = vcmp.eq.f32.partialorder %v1654_v7, 0.0 }
  0xb2   : > { %v552_v61 = vadd.f32 %v544_v4, %v2247_v2  ;;  %v550_v63 = vadd.f32 %v542_v53, %v2250_v3  ;;  %v1659_v2 = vld [vmem:[%s2221_s29 + $0x128] sm:$0xff]  ;;  %v838_v4 = vsel %vm830_vm1, -1e+18, %v822_v26  ;;  %vm950_vm5 = vcmp.eq.f32.partialorder %v1697_v24, 0.0 }
  0xb3   : > { %v689_v3 = vmax.f32 %v657_v10, %v681_v17  ;;  %vm704_vm15 = vcmp.eq.f32.partialorder %v1659_v2, 0.0  ;;  %v870_v55 = vmax.f32 %v838_v4, %v862_v50  ;;  %v958_v62 = vsel %vm950_vm5, -1e+18, %v1697_v24 }
  0xb4   : > { %v560_v14 = vadd.f32 %v552_v61, %v496_v52  ;;  %v558_v45 = vadd.f32 %v550_v63, %v494_v21  ;;  %v712_v43 = vsel %vm704_vm15, -1e+18, %v1659_v2  ;;  %v1639_v52 = vld [vmem:[%s2221_s29 + $0x348] sm:$0xff]  ;;  %v501_v2 = vld [vmem:[#allocation2 + $0x38] sm:$0xff]  ;;  %vm676_vm9 = vcmp.eq.f32.partialorder %v1655_v1, 0.0 }
  0xb5   : > { %v2459_v37 = vmax.f32 %v689_v3, %v713_v22  ;;  %v1647_v61 = vld [vmem:[%s2221_s29 + $0x368] sm:$0xff]  ;;  %vm612_vm7 = vcmp.eq.f32.partialorder %v1639_v52, 0.0  ;;  %v683_v4 = vsel %vm675_vm14, -1e+18, %v1654_v7 }
  0xb6   : > { %569 = vst.msk [vmem:[#allocation2 + $0x10] sm:$0xff] %vm321_vm0, %v560_v14  ;;  %v776_v29 = vpop.permute.xlu2 %775  ;;  %v596_v14 = vsel %vm588_vm6, -1e+18, %v580_v51  ;;  %v620_v10 = vsel %vm612_vm7, -1e+18, %v1639_v52  ;;  %vm644_vm8 = vcmp.eq.f32.partialorder %v1647_v61, 0.0 }
  0xb7   : > { %567 = vst.msk [vmem:[#allocation2] sm:$0xff] %vm321_vm0, %v558_v45  ;;  %v520_v31 = vpop.permute.xlu1 %519  ;;  %v789_v35 = vmul.f32 %v776_v29, %v2393_v58  ;;  %v510_v25 = vpop.permute.xlu0 %509  ;;  %v628_v3 = vmax.f32 %v596_v14, %v620_v10  ;;  %v652_v29 = vsel %vm644_vm8, -1e+18, %v1647_v61  ;;  %v815_v61 = vld [vmem:[%s2221_s29 + $0x10] sm:$0xff] }
  0xb8   : > { %v545_v36 = vmul.f32 %v520_v31, %v2402_v30  ;;  %v543_v41 = vmul.f32 %v510_v25, %v2412_v48  ;;  %v495_v30 = vld [vmem:[#allocation2 + $0x8] sm:$0xff]  ;;  %v688_v48 = vmax.f32 %v656_v42, %v680_v38  ;;  %v716_v25 = vsel %vm708_vm10, -1e+18, %v1663_v60  ;;  %v1708_v42 = vld [vmem:[%s2221_s29 + $0x198] sm:$0xff]  ;;  %v1682_v14 = vld [vmem:[%s2221_s29 + $0x70] sm:$0xff] }
  0xb9   : > { %v2465_v46 = vadd.f32 %v789_v35, %v2292_v13  ;;  %v894_v13 = vsel %vm886_vm3, -1e+18, %v1681_v39  ;;  %v1638_v31 = vld [vmem:[%s2221_s29 + $0x2a8] sm:$0xff]  ;;  %v660_v33 = vmax.f32 %v628_v3, %v652_v29  ;;  %vm1121_vm3 = vcmp.eq.f32.partialorder %v1708_v42, 0.0 }
  0xba   : > { %v553_v58 = vadd.f32 %v545_v36, %v2259_v5  ;;  %v551_v49 = vadd.f32 %v543_v41, %v2262_v6  ;;  %v2473_v5 = vmax.f32 %v688_v48, %v712_v43  ;;  %v902_v6 = vmax.f32 %v870_v55, %v894_v13  ;;  %v1662_v38 = vld [vmem:[%s2221_s29 + $0x308] sm:$0xff]  ;;  %v1057_v41 = vld [vmem:[%s2221_s29 + $0x158] sm:$0xff] }
  0xbb   : > { %v684_v36 = vsel %vm676_vm9, -1e+18, %v1655_v1  ;;  %vm611_vm12 = vcmp.eq.f32.partialorder %v1638_v31, 0.0  ;;  %vm707_vm15 = vcmp.eq.f32.partialorder %v1662_v38, 0.0  ;;  %vm1065_vm1 = vcmp.eq.f32.partialorder %v1057_v41, 0.0  ;;  %v1716_v55 = vld [vmem:[%s2221_s29 + $0x1b8] sm:$0xff] }
  0xbc   : > { %v561_v53 = vadd.f32 %v553_v58, %v497_v40  ;;  %v559_v21 = vadd.f32 %v551_v49, %v495_v30  ;;  %v934_v26 = vmax.f32 %v902_v6, %v926_v57  ;;  %v595_v40 = vsel %vm587_vm11, -1e+18, %v579_v27  ;;  %v1724_v13 = vld [vmem:[%s2221_s29 + $0x1d8] sm:$0xff]  ;;  %v582_v3 = vld [vmem:[%s2221_s29 + $0x468] sm:$0xff] }
  0xbd   : > { %v619_v44 = vsel %vm611_vm12, -1e+18, %v1638_v31  ;;  %v1073_v57 = vsel %vm1065_vm1, -1e+18, %v1057_v41  ;;  %v1129_v60 = vsel %vm1121_vm3, -1e+18, %v1708_v42 }
  0xbe   : > { %570 = vst.msk [vmem:[#allocation2 + $0x18] sm:$0xff] %vm321_vm0, %v561_v53  ;;  %v735_v63 = vld [vmem:[#allocation2] sm:$0xff]  ;;  %v991_v47 = vpop.permute.xlu2 %990  ;;  %v2490_v32 = vmax.f32 %v934_v26, %v958_v62  ;;  %v715_v53 = vsel %vm707_vm15, -1e+18, %v1662_v38  ;;  %vm1153_vm4 = vcmp.eq.f32.partialorder %v1716_v55, 0.0  ;;  %vm1185_vm5 = vcmp.eq.f32.partialorder %v1724_v13, 0.0 }
  0xbf   : > { %568 = vst.msk [vmem:[#allocation2 + $0x8] sm:$0xff] %vm321_vm0, %v559_v21  ;;  %v540_v0 = vpop.permute.xlu1 %539  ;;  %v799_v17 = vadd.f32 %v2425_v18, %v735_v63  ;;  %v1024_v20 = vmul.f32 %v991_v47, %v2418_v59  ;;  %v535_v22 = vpop.permute.xlu0 %534  ;;  %v1666_v63 = vld [vmem:[%s2221_s29 + $0x30] sm:$0xff]  ;;  %vm823_vm6 = vcmp.eq.f32.partialorder %v815_v61, 0.0  ;;  %vm911_vm9 = vcmp.eq.f32.partialorder %v1682_v14, 0.0  ;;  %v1649_v38 = vld [vmem:[%s2221_s29 + $0x4a8] sm:$0xff] }
  0xc0   : > { %v549_v45 = vmul.f32 %v540_v0, %v2430_v34  ;;  %v548_v28 = vmul.f32 %v535_v22, %v2439_v54  ;;  %v500_v34 = vld [vmem:[#allocation2 + $0x30] sm:$0xff]  ;;  %v1646_v54 = vld [vmem:[%s2221_s29 + $0x2c8] sm:$0xff]  ;;  %v1193_v22 = vsel %vm1185_vm5, -1e+18, %v1724_v13  ;;  %v831_v26 = vsel %vm823_vm6, -1e+18, %v815_v61 }
  0xc1   : > { %807 = vst.msk [vmem:[#allocation2] sm:$0xff] %vm321_vm0, %v799_v17  ;;  %v2487_v59 = vadd.f32 %v1024_v20, %v2298_v16  ;;  %v692_v16 = vmax.f32 %v660_v33, %v684_v36  ;;  %vm643_vm13 = vcmp.eq.f32.partialorder %v1646_v54, 0.0  ;;  %v737_v47 = vld [vmem:[#allocation2 + $0x10] sm:$0xff]  ;;  %vm847_vm7 = vcmp.eq.f32.partialorder %v1666_v63, 0.0  ;;  %v1665_v41 = vld [vmem:[%s2221_s29 + $0x4e8] sm:$0xff] }
  0xc2   : > { %v557_v18 = vadd.f32 %v549_v45, %v2271_v8  ;;  %v556_v35 = vadd.f32 %v548_v28, %v2274_v9  ;;  %v1700_v8 = vld [vmem:[%s2221_s29 + $0x178] sm:$0xff]  ;;  %v627_v9 = vmax.f32 %v595_v40, %v619_v44  ;;  %v651_v30 = vsel %vm643_vm13, -1e+18, %v1646_v54  ;;  %v1641_v28 = vld [vmem:[%s2221_s29 + $0x488] sm:$0xff] }
  0xc3   : > { %v724_v58 = vmax.f32 %v692_v16, %v716_v25  ;;  %vm1089_vm2 = vcmp.eq.f32.partialorder %v1700_v8, 0.0  ;;  %v855_v27 = vsel %vm847_vm7, -1e+18, %v1666_v63  ;;  %v919_v33 = vsel %vm911_vm9, -1e+18, %v1682_v14  ;;  %v1657_v40 = vld [vmem:[%s2221_s29 + $0x4c8] sm:$0xff] }
  0xc4   : > { %v565_v39 = vadd.f32 %v557_v18, %v501_v2  ;;  %v564_v43 = vadd.f32 %v556_v35, %v500_v34  ;;  %v659_v52 = vmax.f32 %v627_v9, %v651_v30  ;;  %v1097_v1 = vsel %vm1089_vm2, -1e+18, %v1700_v8  ;;  %v740_v42 = vld [vmem:[#allocation2 + $0x28] sm:$0xff] }
  0xc5   : > { %v1105_v62 = vmax.f32 %v1073_v57, %v1097_v1  ;;  %v1161_v2 = vsel %vm1153_vm4, -1e+18, %v1716_v55  ;;  %v863_v18 = vmax.f32 %v831_v26, %v855_v27  ;;  %vm590_vm11 = vcmp.eq.f32.partialorder %v582_v3, 0.0  ;;  %v1841_v9 = vld [vmem:[%s2229_s28 + $0x88] sm:$0xff]  ;;  %v1727_v57 = vld [vmem:[%s2221_s29 + $0x3b8] sm:$0xff]  ;;  %v818_v1 = vld [vmem:[%s2221_s29 + $0x1f0] sm:$0xff] }
  0xc6   : > { %574 = vst.msk [vmem:[#allocation2 + $0x38] sm:$0xff] %vm321_vm0, %v565_v39  ;;  %v1006_v24 = vpop.permute.xlu2 %1005  ;;  %v736_v17 = vld [vmem:[#allocation2 + $0x8] sm:$0xff]  ;;  %vm614_vm12 = vcmp.eq.f32.partialorder %v1641_v28, 0.0  ;;  %v598_v44 = vsel %vm590_vm11, -1e+18, %v582_v3  ;;  %vm646_vm13 = vcmp.eq.f32.partialorder %v1649_v38, 0.0 }
  0xc7   : > { %573 = vst.msk [vmem:[#allocation2 + $0x30] sm:$0xff] %vm321_vm0, %v564_v43  ;;  %v756_v49 = vpop.permute.xlu1 %755  ;;  %v1027_v48 = vmul.f32 %v1006_v24, %v2449_v15  ;;  %v751_v51 = vpop.permute.xlu0 %750  ;;  %v1137_v20 = vmax.f32 %v1105_v62, %v1129_v60  ;;  %vm678_vm14 = vcmp.eq.f32.partialorder %v1657_v40, 0.0  ;;  %vm710_vm15 = vcmp.eq.f32.partialorder %v1665_v41, 0.0  ;;  %v1843_v26 = vld [vmem:[%s2229_s28 + $0x10] sm:$0xff] }
  0xc8   : > { %v785_v50 = vmul.f32 %v756_v49, %v2459_v37  ;;  %v784_v21 = vmul.f32 %v751_v51, %v2473_v5  ;;  %v691_v37 = vmax.f32 %v659_v52, %v683_v4  ;;  %v1674_v5 = vld [vmem:[%s2221_s29 + $0x50] sm:$0xff]  ;;  %v1060_v49 = vld [vmem:[%s2221_s29 + $0x338] sm:$0xff]  ;;  %v739_v52 = vld [vmem:[#allocation2 + $0x20] sm:$0xff]  ;;  %v718_v60 = vsel %vm710_vm15, -1e+18, %v1665_v41 }
  0xc9   : > { %v2508_v6 = vadd.f32 %v1027_v48, %v2304_v19  ;;  %vm879_vm8 = vcmp.eq.f32.partialorder %v1674_v5, 0.0  ;;  %v1703_v48 = vld [vmem:[%s2221_s29 + $0x358] sm:$0xff]  ;;  %vm1068_vm1 = vcmp.eq.f32.partialorder %v1060_v49, 0.0  ;;  %vm1188_vm5 = vcmp.eq.f32.partialorder %v1727_v57, 0.0  ;;  %v1676_v41 = vld [vmem:[%s2221_s29 + $0x190] sm:$0xff] }
  0xca   : > { %v793_v15 = vadd.f32 %v785_v50, %v2283_v11  ;;  %v792_v0 = vadd.f32 %v784_v21, %v2286_v12  ;;  %v723_v19 = vmax.f32 %v691_v37, %v715_v53  ;;  %v1690_v11 = vld [vmem:[%s2221_s29 + $0x90] sm:$0xff]  ;;  %v1169_v12 = vmax.f32 %v1137_v20, %v1161_v2  ;;  %v1711_v50 = vld [vmem:[%s2221_s29 + $0x378] sm:$0xff] }
  0xcb   : > { %v887_v34 = vsel %vm879_vm8, -1e+18, %v1674_v5  ;;  %vm943_vm10 = vcmp.eq.f32.partialorder %v1690_v11, 0.0  ;;  %v1719_v53 = vld [vmem:[%s2221_s29 + $0x398] sm:$0xff]  ;;  %v686_v21 = vsel %vm678_vm14, -1e+18, %v1657_v40 }
  0xcc   : > { %v801_v10 = vadd.f32 %v793_v15, %v737_v47  ;;  %v800_v45 = vadd.f32 %v792_v0, %v736_v17  ;;  %v1201_v36 = vmax.f32 %v1169_v12, %v1193_v22  ;;  %v951_v25 = vsel %vm943_vm10, -1e+18, %v1690_v11  ;;  %v1677_v20 = vld [vmem:[%s2221_s29 + $0x230] sm:$0xff] }
  0xcd   : > { %v895_v16 = vmax.f32 %v863_v18, %v887_v34  ;;  %vm1092_vm2 = vcmp.eq.f32.partialorder %v1703_v48, 0.0  ;;  %vm1124_vm3 = vcmp.eq.f32.partialorder %v1711_v50, 0.0  ;;  %v1076_v63 = vsel %vm1068_vm1, -1e+18, %v1060_v49 }
  0xce   : > { %809 = vst.msk [vmem:[#allocation2 + $0x10] sm:$0xff] %vm321_vm0, %v801_v10  ;;  %v1021_v29 = vpop.permute.xlu2 %1020  ;;  %v1100_v47 = vsel %vm1092_vm2, -1e+18, %v1703_v48  ;;  %vm1156_vm4 = vcmp.eq.f32.partialorder %v1719_v53, 0.0  ;;  %v1132_v17 = vsel %vm1124_vm3, -1e+18, %v1711_v50 }
  0xcf   : > { %808 = vst.msk [vmem:[#allocation2 + $0x8] sm:$0xff] %vm321_vm0, %v800_v45  ;;  %v771_v31 = vpop.permute.xlu1 %770  ;;  %v1030_v54 = vmul.f32 %v1021_v29, %v2490_v32  ;;  %v766_v35 = vpop.permute.xlu0 %765  ;;  %v1840_v32 = vld [vmem:[%s2229_s28 + $0xa8] sm:$0xff]  ;;  %v927_v4 = vmax.f32 %v895_v16, %v919_v33  ;;  %v1108_v10 = vmax.f32 %v1076_v63, %v1100_v47  ;;  %v1164_v11 = vsel %vm1156_vm4, -1e+18, %v1719_v53  ;;  %v1842_v45 = vld [vmem:[%s2229_s28 + $0x58] sm:$0xff]  ;;  %v1693_v29 = vld [vmem:[%s2221_s29 + $0x270] sm:$0xff] }
  0xd0   : > { %v788_v7 = vmul.f32 %v771_v31, %v724_v58  ;;  %v787_v39 = vmul.f32 %v766_v35, %v723_v19  ;;  %v622_v58 = vsel %vm614_vm12, -1e+18, %v1641_v28  ;;  %v1669_v19 = vld [vmem:[%s2221_s29 + $0x210] sm:$0xff]  ;;  %vm826_vm6 = vcmp.eq.f32.partialorder %v818_v1, 0.0  ;;  %v975_v31 = vld [vmem:[#allocation2] sm:$0xff]  ;;  %v738_v33 = vld [vmem:[#allocation2 + $0x18] sm:$0xff] }
  0xd1   : > { %v2525_v8 = vadd.f32 %v1030_v54, %v2313_v23  ;;  %v630_v24 = vmax.f32 %v598_v44, %v622_v58  ;;  %v654_v23 = vsel %vm646_vm13, -1e+18, %v1649_v38  ;;  %v959_v13 = vmax.f32 %v927_v4, %v951_v25  ;;  %v1685_v28 = vld [vmem:[%s2221_s29 + $0x250] sm:$0xff] }
  0xd2   : > { %v796_v43 = vadd.f32 %v1840_v32, %v788_v7  ;;  %v795_v30 = vadd.f32 %v1841_v9, %v787_v39  ;;  %v1140_v12 = vmax.f32 %v1108_v10, %v1132_v17  ;;  %v1196_v27 = vsel %vm1188_vm5, -1e+18, %v1727_v57  ;;  %v817_v25 = vld [vmem:[%s2221_s29 + $0x150] sm:$0xff]  ;;  %v1844_v39 = vld [vmem:[%s2229_s28 + $0xe8] sm:$0xff] }
  0xd3   : > { %v662_v61 = vmax.f32 %v630_v24, %v654_v23  ;;  %v834_v34 = vsel %vm826_vm6, -1e+18, %v818_v1  ;;  %vm850_vm7 = vcmp.eq.f32.partialorder %v1669_v19, 0.0  ;;  %vm882_vm8 = vcmp.eq.f32.partialorder %v1677_v20, 0.0  ;;  %v1668_v38 = vld [vmem:[%s2221_s29 + $0x170] sm:$0xff] }
  0xd4   : > { %v804_v51 = vadd.f32 %v796_v43, %v740_v42  ;;  %v803_v55 = vadd.f32 %v795_v30, %v739_v52  ;;  %v1172_v7 = vmax.f32 %v1140_v12, %v1164_v11  ;;  %v858_v35 = vsel %vm850_vm7, -1e+18, %v1669_v19  ;;  %v1684_v42 = vld [vmem:[%s2221_s29 + $0x1b0] sm:$0xff]  ;;  %v742_v43 = vld [vmem:[#allocation2 + $0x38] sm:$0xff] }
  0xd5   : > { %v694_v62 = vmax.f32 %v662_v61, %v686_v21  ;;  %v866_v40 = vmax.f32 %v834_v34, %v858_v35  ;;  %vm914_vm9 = vcmp.eq.f32.partialorder %v1685_v28, 0.0  ;;  %vm946_vm10 = vcmp.eq.f32.partialorder %v1693_v29, 0.0  ;;  %v1692_v32 = vld [vmem:[%s2221_s29 + $0x1d0] sm:$0xff] }
  0xd6   : > { %812 = vst.msk [vmem:[#allocation2 + $0x28] sm:$0xff] %vm321_vm0, %v804_v51  ;;  %v1236_v15 = vpop.permute.xlu2 %1235  ;;  %v1204_v44 = vmax.f32 %v1172_v7, %v1196_v27  ;;  %v922_v58 = vsel %vm914_vm9, -1e+18, %v1685_v28  ;;  %v954_v9 = vsel %vm946_vm10, -1e+18, %v1693_v29  ;;  %v802_v30 = vadd.f32 %v2442_v56, %v738_v33  ;;  %v821_v50 = vld [vmem:[%s2221_s29 + $0x3d0] sm:$0xff] }
  0xd7   : > { %811 = vst.msk [vmem:[#allocation2 + $0x20] sm:$0xff] %vm321_vm0, %v803_v55  ;;  %v986_v37 = vpop.permute.xlu1 %985  ;;  %v1265_v0 = vmul.f32 %v1236_v15, %v1201_v36  ;;  %v781_v14 = vpop.permute.xlu0 %780  ;;  %v726_v2 = vmax.f32 %v694_v62, %v718_v60  ;;  %v890_v36 = vsel %vm882_vm8, -1e+18, %v1677_v20  ;;  %vm825_vm11 = vcmp.eq.f32.partialorder %v817_v25, 0.0  ;;  %v1672_v51 = vld [vmem:[%s2221_s29 + $0x3f0] sm:$0xff]  ;;  %v1845_v60 = vld [vmem:[%s2229_s28 + $0xb8] sm:$0xff] }
  0xd8   : > { %v1023_v5 = vmul.f32 %v986_v37, %v959_v13  ;;  %v898_v49 = vmax.f32 %v866_v40, %v890_v36  ;;  %vm849_vm12 = vcmp.eq.f32.partialorder %v1668_v38, 0.0  ;;  %v1680_v52 = vld [vmem:[%s2221_s29 + $0x410] sm:$0xff]  ;;  %810 = vst.msk [vmem:[#allocation2 + $0x18] sm:$0xff] %vm321_vm0, %v802_v30  ;;  %v833_v53 = vsel %vm825_vm11, -1e+18, %v817_v25  ;;  %v1707_v40 = vld [vmem:[%s2221_s29 + $0xf8] sm:$0xff] }
  0xd9   : > { %v2540_v22 = vadd.f32 %v1842_v45, %v1265_v0  ;;  %v790_v18 = vmul.f32 %v781_v14, %v726_v2  ;;  %v857_v55 = vsel %vm849_vm12, -1e+18, %v1668_v38  ;;  %vm881_vm13 = vcmp.eq.f32.partialorder %v1676_v41, 0.0  ;;  %v1688_v57 = vld [vmem:[%s2221_s29 + $0x430] sm:$0xff] }
  0xda   : > { %v1031_v3 = vadd.f32 %v1843_v26, %v1023_v5  ;;  %v930_v56 = vmax.f32 %v898_v49, %v922_v58  ;;  %v865_v13 = vmax.f32 %v833_v53, %v857_v55  ;;  %v889_v61 = vsel %vm881_vm13, -1e+18, %v1676_v41  ;;  %v1696_v1 = vld [vmem:[%s2221_s29 + $0x450] sm:$0xff]  ;;  %v1055_v55 = vld [vmem:[%s2221_s29 + $0x18] sm:$0xff] }
  0xdb   : > { %v798_v16 = vadd.f32 %v1844_v39, %v790_v18  ;;  %vm913_vm14 = vcmp.eq.f32.partialorder %v1684_v42, 0.0  ;;  %vm945_vm15 = vcmp.eq.f32.partialorder %v1692_v32, 0.0  ;;  %vm829_vm1 = vcmp.eq.f32.partialorder %v821_v50, 0.0  ;;  %v741_v5 = vld [vmem:[#allocation2 + $0x30] sm:$0xff] }
  0xdc   : > { %v1039_v54 = vadd.f32 %v1031_v3, %v975_v31  ;;  %v921_v37 = vsel %vm913_vm14, -1e+18, %v1684_v42  ;;  %v962_v62 = vmax.f32 %v930_v56, %v954_v9  ;;  %v897_v63 = vmax.f32 %v865_v13, %v889_v61  ;;  %v820_v14 = vld [vmem:[%s2221_s29 + $0x330] sm:$0xff]  ;;  %v1715_v42 = vld [vmem:[%s2221_s29 + $0x118] sm:$0xff] }
  0xdd   : > { %v806_v4 = vadd.f32 %v798_v16, %v742_v43  ;;  %v953_v47 = vsel %vm945_vm15, -1e+18, %v1692_v32  ;;  %v837_v0 = vsel %vm829_vm1, -1e+18, %v821_v50  ;;  %vm853_vm2 = vcmp.eq.f32.partialorder %v1672_v51, 0.0  ;;  %v1671_v10 = vld [vmem:[%s2221_s29 + $0x350] sm:$0xff] }
  0xde   : > { %1047 = vst.msk [vmem:[#allocation2] sm:$0xff] %vm321_vm0, %v1039_v54  ;;  %v1251_v24 = vpop.permute.xlu2 %1250  ;;  %vm885_vm3 = vcmp.eq.f32.partialorder %v1680_v52, 0.0  ;;  %vm917_vm4 = vcmp.eq.f32.partialorder %v1688_v57, 0.0  ;;  %vm949_vm5 = vcmp.eq.f32.partialorder %v1696_v1, 0.0  ;;  %v929_v19 = vmax.f32 %v897_v63, %v921_v37  ;;  %v1679_v11 = vld [vmem:[%s2221_s29 + $0x370] sm:$0xff]  ;;  %v1056_v54 = vld [vmem:[%s2221_s29 + $0xb8] sm:$0xff] }
  0xdf   : > { %v1001_v48 = vpop.permute.xlu1 %1000  ;;  %v1268_v23 = vmul.f32 %v1251_v24, %v1204_v44  ;;  %814 = vst.msk [vmem:[#allocation2 + $0x38] sm:$0xff] %vm321_vm0, %v806_v4  ;;  %v996_v21 = vpop.permute.xlu0 %995  ;;  %v861_v20 = vsel %vm853_vm2, -1e+18, %v1672_v51  ;;  %v893_v2 = vsel %vm885_vm3, -1e+18, %v1680_v52  ;;  %v805_v12 = vadd.f32 %v2465_v46, %v741_v5  ;;  %v1687_v27 = vld [vmem:[%s2221_s29 + $0x390] sm:$0xff] }
  0xe0   : > { %v1026_v17 = vmul.f32 %v1001_v48, %v962_v62  ;;  %v869_v45 = vmax.f32 %v837_v0, %v861_v20  ;;  %v925_v26 = vsel %vm917_vm4, -1e+18, %v1688_v57  ;;  %v957_v3 = vsel %vm949_vm5, -1e+18, %v1696_v1  ;;  %v978_v28 = vld [vmem:[#allocation2 + $0x18] sm:$0xff]  ;;  %v1846_v29 = vld [vmem:[%s2229_s28 + $0x70] sm:$0xff] }
  0xe1   : > { %v2561_v15 = vadd.f32 %v1845_v60, %v1268_v23  ;;  %v961_v18 = vmax.f32 %v929_v19, %v953_v47  ;;  %vm828_vm6 = vcmp.eq.f32.partialorder %v820_v14, 0.0  ;;  %vm852_vm7 = vcmp.eq.f32.partialorder %v1671_v10, 0.0  ;;  %v1695_v33 = vld [vmem:[%s2221_s29 + $0x3b0] sm:$0xff]  ;;  %813 = vst.msk [vmem:[#allocation2 + $0x30] sm:$0xff] %vm321_vm0, %v805_v12  ;;  %v1699_v16 = vld [vmem:[%s2221_s29 + $0xd8] sm:$0xff]  ;;  %v976_v50 = vld [vmem:[#allocation2 + $0x8] sm:$0xff] }
  0xe2   : > { %v1034_v31 = vadd.f32 %v1846_v29, %v1026_v17  ;;  %v901_v7 = vmax.f32 %v869_v45, %v893_v2  ;;  %v836_v35 = vsel %vm828_vm6, -1e+18, %v820_v14  ;;  %v860_v36 = vsel %vm852_vm7, -1e+18, %v1671_v10  ;;  %v1847_v32 = vld [vmem:[%s2229_s28 + $0x50] sm:$0xff]  ;;  %v1723_v4 = vld [vmem:[%s2221_s29 + $0x138] sm:$0xff] }
  0xe3   : > { %vm884_vm8 = vcmp.eq.f32.partialorder %v1679_v11, 0.0  ;;  %v1025_v25 = vmul.f32 %v996_v21, %v961_v18  ;;  %v868_v38 = vmax.f32 %v836_v35, %v860_v36  ;;  %vm916_vm9 = vcmp.eq.f32.partialorder %v1687_v27, 0.0  ;;  %v977_v24 = vld [vmem:[#allocation2 + $0x10] sm:$0xff]  ;;  %v1698_v56 = vld [vmem:[%s2221_s29 + $0x38] sm:$0xff]  ;;  %v980_v29 = vld [vmem:[#allocation2 + $0x28] sm:$0xff] }
  0xe4   : > { %v1042_v46 = vadd.f32 %v1034_v31, %v978_v28  ;;  %v892_v39 = vsel %vm884_vm8, -1e+18, %v1679_v11  ;;  %v933_v41 = vmax.f32 %v901_v7, %v925_v26  ;;  %vm948_vm10 = vcmp.eq.f32.partialorder %v1695_v33, 0.0  ;;  %v1706_v21 = vld [vmem:[%s2221_s29 + $0x58] sm:$0xff]  ;;  %v1848_v0 = vld [vmem:[%s2229_s28 + $0xd0] sm:$0xff] }
  0xe5   : > { %vm1064_vm11 = vcmp.eq.f32.partialorder %v1056_v54, 0.0  ;;  %v1033_v43 = vadd.f32 %v1847_v32, %v1025_v25  ;;  %v900_v44 = vmax.f32 %v868_v38, %v892_v39  ;;  %v924_v58 = vsel %vm916_vm9, -1e+18, %v1687_v27  ;;  %v1714_v57 = vld [vmem:[%s2221_s29 + $0x78] sm:$0xff]  ;;  %v1364_v28 = vld [vmem:[#allocation8 + $0x10] sm:$0xff]  ;;  %v1363_v25 = vld [vmem:[#allocation8 + $0x8] sm:$0xff] }
  0xe6   : > { %1050 = vst.msk [vmem:[#allocation2 + $0x18] sm:$0xff] %vm321_vm0, %v1042_v46  ;;  %v956_v9 = vsel %vm948_vm10, -1e+18, %v1695_v33  ;;  %v965_v49 = vmax.f32 %v933_v41, %v957_v3  ;;  %v1072_v48 = vsel %vm1064_vm11, -1e+18, %v1056_v54  ;;  %vm1088_vm12 = vcmp.eq.f32.partialorder %v1699_v16, 0.0 }
  0xe7   : > { %v1016_v34 = vpop.permute.xlu1 %1015  ;;  %v1011_v30 = vpop.permute.xlu0 %1010  ;;  %vm1120_vm13 = vcmp.eq.f32.partialorder %v1707_v40, 0.0  ;;  %v1041_v51 = vadd.f32 %v1033_v43, %v977_v24  ;;  %v932_v52 = vmax.f32 %v900_v44, %v924_v58  ;;  %v1096_v23 = vsel %vm1088_vm12, -1e+18, %v1699_v16  ;;  %v1722_v63 = vld [vmem:[%s2221_s29 + $0x98] sm:$0xff]  ;;  %v1849_v31 = vld [vmem:[%s2229_s28 + $0xb0] sm:$0xff]  ;;  %v979_v46 = vld [vmem:[#allocation2 + $0x20] sm:$0xff] }
  0xe8   : > { %v1128_v53 = vsel %vm1120_vm13, -1e+18, %v1707_v40  ;;  %v1029_v13 = vmul.f32 %v1016_v34, %v965_v49  ;;  %v1104_v61 = vmax.f32 %v1072_v48, %v1096_v23  ;;  %vm1152_vm14 = vcmp.eq.f32.partialorder %v1715_v42, 0.0  ;;  %v981_v47 = vld [vmem:[#allocation2 + $0x30] sm:$0xff]  ;;  %v1059_v10 = vld [vmem:[%s2221_s29 + $0x298] sm:$0xff] }
  0xe9   : > { %vm1184_vm15 = vcmp.eq.f32.partialorder %v1723_v4, 0.0  ;;  %1049 = vst.msk [vmem:[#allocation2 + $0x10] sm:$0xff] %vm321_vm0, %v1041_v51  ;;  %v964_v1 = vmax.f32 %v932_v52, %v956_v9  ;;  %v1160_v60 = vsel %vm1152_vm14, -1e+18, %v1715_v42  ;;  %v1040_v62 = vadd.f32 %v2487_v59, %v976_v50  ;;  %v1702_v17 = vld [vmem:[%s2221_s29 + $0x2b8] sm:$0xff]  ;;  %v1362_v9 = vld [vmem:[#allocation8] sm:$0xff] }
  0xea   : > { %v1192_v37 = vsel %vm1184_vm15, -1e+18, %v1723_v4  ;;  %v1037_v5 = vadd.f32 %v1848_v0, %v1029_v13  ;;  %v1136_v14 = vmax.f32 %v1104_v61, %v1128_v53  ;;  %vm1063_vm1 = vcmp.eq.f32.partialorder %v1055_v55, 0.0  ;;  %v1710_v12 = vld [vmem:[%s2221_s29 + $0x2d8] sm:$0xff] }
  0xeb   : > { %vm1087_vm2 = vcmp.eq.f32.partialorder %v1698_v56, 0.0  ;;  %v1028_v19 = vmul.f32 %v1011_v30, %v964_v1  ;;  %1048 = vst.msk [vmem:[#allocation2 + $0x8] sm:$0xff] %vm321_vm0, %v1040_v62  ;;  %v1071_v2 = vsel %vm1063_vm1, -1e+18, %v1055_v55  ;;  %vm1119_vm3 = vcmp.eq.f32.partialorder %v1706_v21, 0.0  ;;  %v1365_v27 = vld [vmem:[#allocation8 + $0x18] sm:$0xff] }
  0xec   : > { %v1095_v11 = vsel %vm1087_vm2, -1e+18, %v1698_v56  ;;  %v1045_v59 = vadd.f32 %v1037_v5, %v981_v47  ;;  %v1168_v45 = vmax.f32 %v1136_v14, %v1160_v60  ;;  %v1127_v3 = vsel %vm1119_vm3, -1e+18, %v1706_v21  ;;  %v1718_v34 = vld [vmem:[%s2221_s29 + $0x2f8] sm:$0xff]  ;;  %1406 = vmatpush.msra.mxu0 %v1365_v27 }
  0xed   : > { %v1103_v26 = vmax.f32 %v1071_v2, %v1095_v11  ;;  %v1036_v18 = vadd.f32 %v1849_v31, %v1028_v19  ;;  %vm1151_vm4 = vcmp.eq.f32.partialorder %v1714_v57, 0.0  ;;  %vm1183_vm5 = vcmp.eq.f32.partialorder %v1722_v63, 0.0  ;;  %v1726_v33 = vld [vmem:[%s2221_s29 + $0x318] sm:$0xff] }
  0xee   : > { %vm1067_vm6 = vcmp.eq.f32.partialorder %v1059_v10, 0.0  ;;  %1053 = vst.msk [vmem:[#allocation2 + $0x30] sm:$0xff] %vm321_vm0, %v1045_v59  ;;  %v1200_v54 = vmax.f32 %v1168_v45, %v1192_v37  ;;  %v1159_v35 = vsel %vm1151_vm4, -1e+18, %v1714_v57  ;;  %v1191_v36 = vsel %vm1183_vm5, -1e+18, %v1722_v63  ;;  %1407 = vmatpush.msra.mxu0 %v1364_v28 }
  0xef   : > { %v1231_v20 = vpop.permute.xlu1 %1230  ;;  %v1135_v7 = vmax.f32 %v1103_v26, %v1127_v3  ;;  %v1044_v38 = vadd.f32 %v1036_v18, %v980_v29  ;;  %v1226_v39 = vpop.permute.xlu0 %1225  ;;  %v1075_v16 = vsel %vm1067_vm6, -1e+18, %v1059_v10  ;;  %vm1091_vm7 = vcmp.eq.f32.partialorder %v1702_v17, 0.0  ;;  %v1058_v40 = vld [vmem:[%s2221_s29 + $0x1f8] sm:$0xff]  ;;  %v1215_v10 = vld [vmem:[#allocation2] sm:$0xff] }
  0xf0   : > { %vm1123_vm8 = vcmp.eq.f32.partialorder %v1710_v12, 0.0  ;;  %v1701_v41 = vld [vmem:[%s2221_s29 + $0x218] sm:$0xff]  ;;  %v1217_v42 = vld [vmem:[#allocation2 + $0x10] sm:$0xff]  ;;  %v1264_v32 = vmul.f32 %v1231_v20, %v1200_v54  ;;  %v1099_v44 = vsel %vm1091_vm7, -1e+18, %v1702_v17  ;;  %vm1155_vm9 = vcmp.eq.f32.partialorder %v1718_v34, 0.0  ;;  %1408 = vmatpush.msra.mxu0 %v1363_v25 }
  0xf1   : > { %v1167_v43 = vmax.f32 %v1135_v7, %v1159_v35  ;;  %v1131_v58 = vsel %vm1123_vm8, -1e+18, %v1710_v12  ;;  %v1281_v30 = vadd.f32 %v2540_v22, %v1217_v42  ;;  %1052 = vst.msk [vmem:[#allocation2 + $0x28] sm:$0xff] %vm321_vm0, %v1044_v38  ;;  %v1107_v4 = vmax.f32 %v1075_v16, %v1099_v44  ;;  %v1850_v24 = vld [vmem:[%s2229_s28 + $0x38] sm:$0xff] }
  0xf2   : > { %vm1187_vm10 = vcmp.eq.f32.partialorder %v1726_v33, 0.0  ;;  %v1272_v49 = vadd.f32 %v1850_v24, %v1264_v32  ;;  %v1163_v50 = vsel %vm1155_vm9, -1e+18, %v1718_v34  ;;  %v1709_v52 = vld [vmem:[%s2221_s29 + $0x238] sm:$0xff]  ;;  %v1216_v53 = vld [vmem:[#allocation2 + $0x8] sm:$0xff]  ;;  %v1043_v22 = vadd.f32 %v2508_v6, %v979_v46  ;;  %1409 = vmatpush.msra.mxu0 %v1362_v9 }
  0xf3   : > { %v1199_v48 = vmax.f32 %v1167_v43, %v1191_v36  ;;  %v1195_v51 = vsel %vm1187_vm10, -1e+18, %v1726_v33  ;;  %v1717_v23 = vld [vmem:[%s2221_s29 + $0x258] sm:$0xff]  ;;  %1289 = vst.msk [vmem:[#allocation2 + $0x10] sm:$0xff] %vm321_vm0, %v1281_v30  ;;  %v1139_v55 = vmax.f32 %v1107_v4, %v1131_v58  ;;  %vm1066_vm11 = vcmp.eq.f32.partialorder %v1058_v40, 0.0 }
  0xf4   : > { %vm1090_vm12 = vcmp.eq.f32.partialorder %v1701_v41, 0.0  ;;  %v1725_v56 = vld [vmem:[%s2221_s29 + $0x278] sm:$0xff]  ;;  %v1280_v13 = vadd.f32 %v1272_v49, %v1216_v53  ;;  %v1074_v21 = vsel %vm1066_vm11, -1e+18, %v1058_v40  ;;  %1051 = vst.msk [vmem:[#allocation2 + $0x20] sm:$0xff] %vm321_vm0, %v1043_v22  ;;  %vm1122_vm13 = vcmp.eq.f32.partialorder %v1709_v52, 0.0 }
  0xf5   : > { %v1263_v61 = vmul.f32 %v1226_v39, %v1199_v48  ;;  %v1098_v57 = vsel %vm1090_vm12, -1e+18, %v1701_v41  ;;  %v1062_v1 = vld [vmem:[%s2221_s29 + $0x478] sm:$0xff]  ;;  %v1171_v60 = vmax.f32 %v1139_v55, %v1163_v50  ;;  %vm1154_vm14 = vcmp.eq.f32.partialorder %v1717_v23, 0.0 }
  0xf6   : > { %v1106_v62 = vmax.f32 %v1074_v21, %v1098_v57  ;;  %v1705_v6 = vld [vmem:[%s2221_s29 + $0x498] sm:$0xff]  ;;  %1288 = vst.msk [vmem:[#allocation2 + $0x8] sm:$0xff] %vm321_vm0, %v1280_v13  ;;  %v1130_v5 = vsel %vm1122_vm13, -1e+18, %v1709_v52  ;;  %v1162_v14 = vsel %vm1154_vm14, -1e+18, %v1717_v23 }
  0xf7   : > { %v1246_v37 = vpop.permute.xlu1 %1245  ;;  %v1713_v63 = vld [vmem:[%s2221_s29 + $0x4b8] sm:$0xff]  ;;  %vm1186_vm15 = vcmp.eq.f32.partialorder %v1725_v56, 0.0  ;;  %v1203_v17 = vmax.f32 %v1171_v60, %v1195_v51  ;;  %vm1070_vm1 = vcmp.eq.f32.partialorder %v1062_v1, 0.0  ;;  %vm1094_vm2 = vcmp.eq.f32.partialorder %v1705_v6, 0.0  ;;  %v1241_v28 = vpop.permute.xlu0 %1240 }
  0xf8   : > { %v1851_v47 = vld [vmem:[%s2229_s28 + $0x18] sm:$0xff]  ;;  %v1138_v19 = vmax.f32 %v1106_v62, %v1130_v5  ;;  %v1194_v20 = vsel %vm1186_vm15, -1e+18, %v1725_v56  ;;  %v1220_v59 = vld [vmem:[#allocation2 + $0x28] sm:$0xff]  ;;  %v1078_v26 = vsel %vm1070_vm1, -1e+18, %v1062_v1 }
  0xf9   : > { %v1271_v0 = vadd.f32 %v1851_v47, %v1263_v61  ;;  %v1721_v2 = vld [vmem:[%s2221_s29 + $0x4d8] sm:$0xff]  ;;  %vm1126_vm3 = vcmp.eq.f32.partialorder %v1713_v63, 0.0  ;;  %v1284_v3 = vadd.f32 %v2561_v15, %v1220_v59  ;;  %v1267_v12 = vmul.f32 %v1246_v37, %v1203_v17 }
  0xfa   : > { %v1729_v11 = vld [vmem:[%s2221_s29 + $0x4f8] sm:$0xff]  ;;  %v1170_v27 = vmax.f32 %v1138_v19, %v1162_v14  ;;  %v1102_v29 = vsel %vm1094_vm2, -1e+18, %v1705_v6  ;;  %v1134_v54 = vsel %vm1126_vm3, -1e+18, %v1713_v63  ;;  %vm1158_vm4 = vcmp.eq.f32.partialorder %v1721_v2, 0.0 }
  0xfb   : > { %v1279_v45 = vadd.f32 %v1271_v0, %v1215_v10  ;;  %v982_v31 = vld [vmem:[#allocation2 + $0x38] sm:$0xff]  ;;  %v1110_v33 = vmax.f32 %v1078_v26, %v1102_v29  ;;  %vm1190_vm5 = vcmp.eq.f32.partialorder %v1729_v11, 0.0  ;;  %1292 = vst.msk [vmem:[#allocation2 + $0x28] sm:$0xff] %vm321_vm0, %v1284_v3  ;;  %v1166_v46 = vsel %vm1158_vm4, -1e+18, %v1721_v2  ;;  %v1219_v39 = vld [vmem:[#allocation2 + $0x20] sm:$0xff] }
  0xfc   : > { %v1061_v18 = vld [vmem:[%s2221_s29 + $0x3d8] sm:$0xff]  ;;  %v1202_v36 = vmax.f32 %v1170_v27, %v1194_v20  ;;  %v1198_v25 = vsel %vm1190_vm5, -1e+18, %v1729_v11  ;;  %v1046_v40 = vadd.f32 %v2525_v8, %v982_v31  ;;  %v1300_v4 = vld [vmem:[#allocation2 + $0x10] sm:$0xff]  ;;  %vm1378_vm11 = vcmask 1041409  }
  0xfd   : > { %v1704_v34 = vld [vmem:[%s2221_s29 + $0x3f8] sm:$0xff]  ;;  %1287 = vst.msk [vmem:[#allocation2] sm:$0xff] %vm321_vm0, %v1279_v45  ;;  %v1142_v16 = vmax.f32 %v1110_v33, %v1134_v54  ;;  %vm1069_vm6 = vcmp.eq.f32.partialorder %v1061_v18, 0.0  ;;  %v1299_v58 = vld [vmem:[#allocation2 + $0x8] sm:$0xff]  ;;  %v1320_v61 = vsel %vm321_vm0, %v1300_v4, 0.0  ;;  %vm1380_vm12 = vcmask 1042434  }
  0xfe   : > { %v1712_v7 = vld [vmem:[%s2221_s29 + $0x418] sm:$0xff]  ;;  %vm1093_vm7 = vcmp.eq.f32.partialorder %v1704_v34, 0.0  ;;  %v1266_v32 = vmul.f32 %v1241_v28, %v1202_v36  ;;  %v1077_v43 = vsel %vm1069_vm6, -1e+18, %v1061_v18  ;;  %1054 = vst.msk [vmem:[#allocation2 + $0x38] sm:$0xff] %vm321_vm0, %v1046_v40  ;;  %v1313_v53 = vsel %vm321_vm0, %v1299_v58, 0.0 }
  0xff   : > { %v1852_v35 = vld [vmem:[%s2229_s28 + $0x98] sm:$0xff]  ;;  %v1101_v44 = vsel %vm1093_vm7, -1e+18, %v1704_v34  ;;  %v1174_v9 = vmax.f32 %v1142_v16, %v1166_v46  ;;  %vm1125_vm8 = vcmp.eq.f32.partialorder %v1712_v7, 0.0  ;;  %v1261_v49 = vpop.permute.xlu1 %1260  ;;  %v1314_v13 = vrot.slane %v1313_v53, 4  ;;  %v1256_v60 = vpop.permute.xlu0 %1255  ;;  %v1221_v28 = vld [vmem:[#allocation2 + $0x30] sm:$0xff] }
 0x100   : > { %v1275_v15 = vadd.f32 %v1852_v35, %v1267_v12  ;;  %v1720_v38 = vld [vmem:[%s2221_s29 + $0x438] sm:$0xff]  ;;  %v1109_v30 = vmax.f32 %v1077_v43, %v1101_v44  ;;  %v1133_v48 = vsel %vm1125_vm8, -1e+18, %v1712_v7  ;;  %v1321_v63 = vrot.slane %v1320_v61, 4 }
 0x101   : > { %v1728_v41 = vld [vmem:[%s2221_s29 + $0x458] sm:$0xff]  ;;  %vm1157_vm9 = vcmp.eq.f32.partialorder %v1720_v38, 0.0  ;;  %v1206_v52 = vmax.f32 %v1174_v9, %v1198_v25  ;;  %v1315_v6 = vadd.f32 %v1314_v13, %v1313_v53  ;;  %vm1382_vm13 = vcmask 1043459  }
 0x102   : > { %v1283_v42 = vadd.f32 %v1275_v15, %v1219_v39  ;;  %v1853_v24 = vld [vmem:[%s2229_s28 + $0x78] sm:$0xff]  ;;  %v1165_v50 = vsel %vm1157_vm9, -1e+18, %v1720_v38  ;;  %vm1189_vm10 = vcmp.eq.f32.partialorder %v1728_v41, 0.0  ;;  %v1141_v23 = vmax.f32 %v1109_v30, %v1133_v48  ;;  %v1303_v37 = vld [vmem:[#allocation2 + $0x28] sm:$0xff] }
 0x103   : > { %v1274_v8 = vadd.f32 %v1853_v24, %v1266_v32  ;;  %v1218_v51 = vld [vmem:[#allocation2 + $0x18] sm:$0xff]  ;;  %v1197_v22 = vsel %vm1189_vm10, -1e+18, %v1728_v41  ;;  %v1270_v21 = vmul.f32 %v1261_v49, %v1206_v52  ;;  %v1316_v2 = vrot.slane %v1315_v6, 2 }
 0x104   : > { %1291 = vst.msk [vmem:[#allocation2 + $0x20] sm:$0xff] %vm321_vm0, %v1283_v42  ;;  %v1298_v56 = vld [vmem:[#allocation2] sm:$0xff]  ;;  %v1173_v57 = vmax.f32 %v1141_v23, %v1165_v50  ;;  %v1854_v47 = vld [vmem:[%s2229_s28 + $0xf8] sm:$0xff]  ;;  %v1341_v11 = vsel %vm321_vm0, %v1303_v37, 0.0  ;;  %v1322_v45 = vadd.f32 %v1321_v63, %v1320_v61  ;;  %vm1384_vm14 = vcmask 1044484  }
 0x105   : > { %v1282_v55 = vadd.f32 %v1274_v8, %v1218_v51  ;;  %v1306_v1 = vsel %vm321_vm0, %v1298_v56, 0.0  ;;  %v1278_v0 = vadd.f32 %v1854_v47, %v1270_v21  ;;  %v1222_v14 = vld [vmem:[#allocation2 + $0x38] sm:$0xff]  ;;  %v1342_v29 = vrot.slane %v1341_v11, 4 }
 0x106   : > { %v1307_v62 = vrot.slane %v1306_v1, 4  ;;  %v1205_v5 = vmax.f32 %v1173_v57, %v1197_v22  ;;  %v1855_v3 = vld [vmem:[%s2229_s28 + $0xd8] sm:$0xff]  ;;  %v1317_v33 = vadd.f32 %v1316_v2, %v1315_v6  ;;  %v1323_v7 = vrot.slane %v1322_v45, 2 }
 0x107   : > { %1290 = vst.msk [vmem:[#allocation2 + $0x18] sm:$0xff] %vm321_vm0, %v1282_v55  ;;  %v1286_v17 = vadd.f32 %v1278_v0, %v1222_v14  ;;  %v1343_v39 = vadd.f32 %v1342_v29, %v1341_v11  ;;  %vm1386_vm15 = vcmask 1045509   ;;  %vm1388_vm1 = vcmask 1046534  }
 0x108   : > { %v1308_v10 = vadd.f32 %v1307_v62, %v1306_v1  ;;  %v1269_v19 = vmul.f32 %v1256_v60, %v1205_v5  ;;  %v1318_v25 = vrot.slane %v1317_v33, 1  ;;  %v1324_v40 = vadd.f32 %v1323_v7, %v1322_v45 }
 0x109   : > { %1294 = vst.msk [vmem:[#allocation2 + $0x38] sm:$0xff] %vm321_vm0, %v1286_v17  ;;  %v1344_v30 = vrot.slane %v1343_v39, 2  ;;  %vm1390_vm2 = vcmask 1047559  }
 0x10a   : > { %v1309_v59 = vrot.slane %v1308_v10, 2  ;;  %v1277_v12 = vadd.f32 %v1855_v3, %v1269_v19  ;;  %v1319_v58 = vadd.f32 %v1318_v25, %v1317_v33  ;;  %v1325_v24 = vrot.slane %v1324_v40, 1 }
 0x10b   : > { %v1302_v20 = vld [vmem:[#allocation2 + $0x20] sm:$0xff]  ;;  %v1345_v53 = vadd.f32 %v1344_v30, %v1343_v39  ;;  %v1415_v19 = vlaneseq }
 0x10c   : > { %v1334_v26 = vsel %vm321_vm0, %v1302_v20, 0.0  ;;  %v1285_v31 = vadd.f32 %v1277_v12, %v1221_v28  ;;  %v1310_v34 = vadd.f32 %v1309_v59, %v1308_v10  ;;  %v1326_v22 = vadd.f32 %v1325_v24, %v1324_v40  ;;  %v1835_v20 = vld [vmem:[#allocation9] ss:$0 sm:$0xff] }
 0x10d   : > { %v1335_v27 = vrot.slane %v1334_v26, 4  ;;  %v1346_v1 = vrot.slane %v1345_v53, 1  ;;  %v1416_v2 = vand.u32 127, %v1415_v19 }
 0x10e   : > { %v1301_v18 = vld [vmem:[#allocation2 + $0x18] sm:$0xff]  ;;  %1293 = vst.msk [vmem:[#allocation2 + $0x30] sm:$0xff] %vm321_vm0, %v1285_v31  ;;  %v1311_v46 = vrot.slane %v1310_v34, 1 }
 0x10f   : > { %v1336_v54 = vadd.f32 %v1335_v27, %v1334_v26  ;;  %v1327_v35 = vsel %vm321_vm0, %v1301_v18, 0.0  ;;  %v1347_v47 = vadd.f32 %v1346_v1, %v1345_v53  ;;  %vm1417_vm3 = vcmp.lt.s32.totalorder %v1416_v2, 4 }
 0x110   : > { %v1328_v15 = vrot.slane %v1327_v35, 4  ;;  %v1305_v16 = vld [vmem:[#allocation2 + $0x38] sm:$0xff]  ;;  %v1312_v44 = vadd.f32 %v1311_v46, %v1310_v34 }
 0x111   : > { %v1337_v36 = vrot.slane %v1336_v54, 2  ;;  %v1355_v42 = vsel %vm321_vm0, %v1305_v16, 0.0 }
 0x112   : > { %v1329_v38 = vadd.f32 %v1328_v15, %v1327_v35  ;;  %v1356_v43 = vrot.slane %v1355_v42, 4  ;;  %v1379_v55 = vsel %vm1378_vm11, %v1319_v58, %v1312_v44 }
 0x113   : > { %v1338_v32 = vadd.f32 %v1337_v36, %v1336_v54  ;;  %v1381_v57 = vsel %vm1380_vm12, %v1326_v22, %v1379_v55 }
 0x114   : > { %v1330_v41 = vrot.slane %v1329_v38, 2  ;;  %v1357_v8 = vadd.f32 %v1356_v43, %v1355_v42 }
 0x115   : > { %v1304_v4 = vld [vmem:[#allocation2 + $0x30] sm:$0xff]  ;;  %v1339_v50 = vrot.slane %v1338_v32, 1 }
 0x116   : > { %v1331_v9 = vadd.f32 %v1330_v41, %v1329_v38  ;;  %v1348_v48 = vsel %vm321_vm0, %v1304_v4, 0.0  ;;  %v1358_v52 = vrot.slane %v1357_v8, 2 }
 0x117   : > { %v1349_v51 = vrot.slane %v1348_v48, 4  ;;  %v1340_v61 = vadd.f32 %v1339_v50, %v1338_v32 }
 0x118   : > { %v1332_v49 = vrot.slane %v1331_v9, 1  ;;  %v1359_v13 = vadd.f32 %v1358_v52, %v1357_v8 }
 0x119   : > { %v1350_v56 = vadd.f32 %v1349_v51, %v1348_v48 }
 0x11a   : > { %v1333_v23 = vadd.f32 %v1332_v49, %v1331_v9  ;;  %v1360_v60 = vrot.slane %v1359_v13, 1 }
 0x11b   : > { %v1351_v21 = vrot.slane %v1350_v56, 2 }
 0x11c   : > { %v1383_v37 = vsel %vm1382_vm13, %v1333_v23, %v1381_v57  ;;  %v1361_v0 = vadd.f32 %v1360_v60, %v1359_v13 }
 0x11d   : > { %v1352_v62 = vadd.f32 %v1351_v21, %v1350_v56  ;;  %v1385_v63 = vsel %vm1384_vm14, %v1340_v61, %v1383_v37 }
 0x11e   : > { %v1387_v14 = vsel %vm1386_vm15, %v1347_v47, %v1385_v63 }
 0x11f   : > { %v1353_v6 = vrot.slane %v1352_v62, 1 }
 0x121   : > { %v1354_v5 = vadd.f32 %v1353_v6, %v1352_v62 }
 0x123   : > { %v1389_v10 = vsel %vm1388_vm1, %v1354_v5, %v1387_v14 }
 0x124   : > { %v1391_v17 = vsel %vm1390_vm2, %v1361_v0, %v1389_v10 }
 0x125   : > { %1730 = vmatmul.msk.f32.vlgmr.msra.gmra.mxu0 %vm321_vm0, %v1391_v17 }
 0x1a2   : > { %v1411_v11 = vpop.f32.mrf.mxu0 }
 0x1a3   : > { %v1412_v59 = vadd.f32 %v1835_v20, %v1411_v11 }
 0x1a5   : > { %v1414_v45 = vmax.f32 %v1412_v59, 0.0 }
 0x1a7   : > { %v1418_v26 = vsel %vm1417_vm3, %v1414_v45, -1e+30 }
 0x1a8   : > { %1419 = vmax.xlane.f32.xlu2 %v1418_v26 }
 0x21b   : > { %v1420_v3 = vpop.xlane.xlu2 %1419 }
 0x21c   : > { %v1421_v12 = vsub.f32 %v1418_v26, %v1420_v3 }
 0x21e   : > { %v1422_v27 = vmul.f32 1.442695, %v1421_v12 }
 0x220   : > { %1836 = vpow2.f32 %v1422_v27 }
 0x226   : > { %v1837_v28 = vpop.eup %1836 }
 0x227   : > { %1424 = vadd.xlane.f32.xlu0 %v1837_v28 }
 0x29a   : > { %v1425_v29 = vpop.xlane.xlu0 %1424 }
 0x29b   : > { %1838 = vrcp.f32 %v1425_v29  ;;  %v1437_v33 = vand.u32 2147483648, %v1425_v29  ;;  %v1435_v7 = vand.u32 2147483647, %v1425_v29  ;;  %vm1431_vm4 = vweird.f32 %v1425_v29 }
 0x29d   : > { %v1438_v15 = vor.u32 1.1754944e-38, %v1437_v33  ;;  %vm1436_vm6 = vcmp.eq.f32.partialorder %v1435_v7, 8.507059e+37 }
 0x2a1   : > { %v1839_v31 = vpop.eup %1838 }
 0x2a2   : > { %v1427_v18 = vmul.f32 %v1839_v31, %v1425_v29  ;;  %vm1432_vm0 = vweird.f32 %v1839_v31 }
 0x2a3   : > { %vm1433_vm5 = vmor %vm1431_vm4, %vm1432_vm0 }
 0x2a4   : > { %v1428_v34 = vsub.f32 1.0, %v1427_v18 }
 0x2a6   : > { %v1429_v54 = vmul.f32 %v1839_v31, %v1428_v34 }
 0x2a8   : > { %v1430_v35 = vadd.f32 %v1839_v31, %v1429_v54 }
 0x2aa   : > { %v1434_v36 = vsel %vm1433_vm5, %v1839_v31, %v1430_v35 }
 0x2ab   : > { %v1439_v46 = vsel %vm1436_vm6, %v1438_v15, %v1434_v36 }
 0x2ac   : > { %v1440_v25 = vmul.f32 %v1837_v28, %v1439_v46 }
 0x2ae   : > { %1441 = vst [vmem:[%s312_s11] sm:$0xff] %v1440_v25 }
 0x2af   : > { %2003 = shalt.err (!%p2000_p0)
}
 0x2b0   : > { %1752 = dma.vmem_to_hbm [thread:$0]  (%p2181_p7), %s1456_s22, 128, %s1458_s13, %s1443_s18  }
 0x2b1 PF: > { %s1469_s8 = sand.u32 1, %s2050_s15   ;;  %p1769_p3 = pnand %p1589_p11, %p2148_p6 }
 0x2b2   : > { %s1470_s29 = scalar_lea.sflag [#allocation5], %s1469_s8 }
 0x2b3   : > { %p1770_p5 = pneg %p1769_p3 }
 0x2b5   : > { %2045 = dma.done.wait (%p1770_p5), %s1470_s29, 128  }
 0x2b6   : > { %2047 = vsyncadd (%p1770_p5), %s1470_s29, 4294967168  ;;  %s24_s20 = sadd.s32 1, %s2070_s20   ;;  %s2703_s2 = sld [smem:[#allocation17_spill]] }
 0x2b7   : > { %p21_p9 = scmp.ge.s32.totalorder %s24_s20, 4   ;;  %s2704_s17 = sld [smem:[#allocation19_spill]] }
 0x2b8   : > { %s2705_s14 = sld [smem:[#allocation18_spill]]  ;;  %s2706_s15 = smov %s2054_s16 }
 0x2b9   : > { %s2708_s18 = smov %s2066_s19 }
 0x2ba   :  { %23 = sbr.rel (!%p21_p9) target bundleno = 12 (0xc), region = 114 }
 0x2bc   : > { %s2707_s16 = smov %s2703_s2 }
 0x2be   : > { %s2709_s19 = smov %s2705_s14 }
 0x2bf   :  { %1476 = vsyncpa [#allocation4], 1 }
 0x2c0   :  { %1478 = vsyncpa [#allocation4 + $0x1], 1 }
 0x2c1   :  { %1479 = vsyncpa [#allocation7], 1 }
 0x2c2   :  { %1481 = vsyncpa [#allocation7 + $0x1], 1 }
 0x2c3   :  { %1482 = vsyncpa [#allocation10], 1 }
 0x2c4   :  { %1483 = vsyncpa [#allocation5], 1 }
 0x2c5   :  { %1485 = vsyncpa [#allocation5 + $0x1], 1 }

</bundles_post_ra>
